<compile_context>
chip_gen: v7x
topology: tpu7x:2x2x1
jax: 0.10.0
libtpu: 0.0.40
codegen_flags: <defaults>
</compile_context>

<pallas_src>
import jax
import jax.numpy as jnp
from jax.experimental import pallas as pl
from jax.experimental.pallas import tpu as pltpu


# ---------------------------------------------------------------------------
# fused kernel: encoder LSTM -> fc_enc -> fc_dec -> decoder LSTM
# ---------------------------------------------------------------------------
def lstm_autoencoder_kernel(x_ref,        # (B, T, I)
                            w_ih_e_ref,   # (I, 4H)   encoder, gates i|f|g|o on lanes
                            w_hh_e_ref,   # (H, 4H)
                            b_e_ref,      # (1, 4H)   (= bias_ih + bias_hh)
                            w_fce_ref,    # (H, L)
                            b_fce_ref,    # (1, L)
                            w_fcd_ref,    # (L, H)
                            b_fcd_ref,    # (1, H)
                            w_ih_d_ref,   # (H, 4I)   decoder (hidden = I)
                            w_hh_d_ref,   # (I, 4I)
                            b_d_ref,      # (1, 4I)
                            out_ref):     # (B, T, I)
    B, T, I = x_ref.shape
    H = w_hh_e_ref.shape[0]
    f32 = jnp.float32

    def cell(gates, c_prev, hid):
        # gates: (B, 4*hid), lane-stacked i|f|g|o
        i_g = jax.nn.sigmoid(gates[:, 0 * hid:1 * hid])
        f_g = jax.nn.sigmoid(gates[:, 1 * hid:2 * hid])
        g_g = jnp.tanh(gates[:, 2 * hid:3 * hid])
        o_g = jax.nn.sigmoid(gates[:, 3 * hid:4 * hid])
        c = f_g * c_prev + i_g * g_g
        h = o_g * jnp.tanh(c)
        return h, c

    # ---- encoder: hoist the input projection over all timesteps -----------
    x_all = x_ref[...].reshape(B * T, I)                         # (B*T, I)
    xg_all = (jnp.dot(x_all, w_ih_e_ref[...], preferred_element_type=f32)
              + b_e_ref[...])                                    # (B*T, 4H)
    xg_all = xg_all.reshape(B, T, 4 * H)

    w_hh_e = w_hh_e_ref[...]
    h = jnp.zeros((B, H), f32)
    c = jnp.zeros((B, H), f32)
    for t in range(T):                                           # static full unroll
        gates = xg_all[:, t, :] + jnp.dot(h, w_hh_e, preferred_element_type=f32)
        h, c = cell(gates, c, H)

    # ---- bottleneck: z = fc_enc(h_T); dec_in = fc_dec(z) --------------------
    z = jnp.dot(h, w_fce_ref[...], preferred_element_type=f32) + b_fce_ref[...]
    dec_in = (jnp.dot(z, w_fcd_ref[...], preferred_element_type=f32)
              + b_fcd_ref[...])                                  # (B, H)

    # ---- decoder: input is constant over time -> project exactly once ------
    xg_d = (jnp.dot(dec_in, w_ih_d_ref[...], preferred_element_type=f32)
            + b_d_ref[...])                                      # (B, 4I)
    w_hh_d = w_hh_d_ref[...]
    hd = jnp.zeros((B, I), f32)
    cd = jnp.zeros((B, I), f32)
    for t in range(T):                                           # static full unroll
        gates = xg_d + jnp.dot(hd, w_hh_d, preferred_element_type=f32)
        hd, cd = cell(gates, cd, I)
        out_ref[:, t, :] = hd.astype(out_ref.dtype)              # VMEM store; one HBM
                                                                 # writeback at kernel end


# ---------------------------------------------------------------------------
# wrapper (single pallas_call, no grid, whole arrays resident in VMEM)
# ---------------------------------------------------------------------------
@jax.jit
def lstm_autoencoder_forward(x, params):
    """x: (B, T, I) float32 -> (B, T, I) float32 (batch_first, like torch)."""
    B, T, I = x.shape
    vmem = pl.BlockSpec(memory_space=pltpu.MemorySpace.VMEM)
    return pl.pallas_call(
        lstm_autoencoder_kernel,
        out_shape=jax.ShapeDtypeStruct((B, T, I), jnp.float32),
        in_specs=[vmem] * 11,
        out_specs=vmem,
    )(x,
      params["w_ih_e"], params["w_hh_e"], params["b_e"],
      params["w_fce"], params["b_fce"], params["w_fcd"], params["b_fcd"],
      params["w_ih_d"], params["w_hh_d"], params["b_d"])


# ---------------------------------------------------------------------------
# pure-JAX reference (mirrors torch semantics) for correctness check
# ---------------------------------------------------------------------------
def _lstm_ref(x_tm, w_ih, w_hh, b, hid):
    T, B, _ = x_tm.shape
    h0 = jnp.zeros((B, hid), jnp.float32)
    c0 = jnp.zeros((B, hid), jnp.float32)

    def step(carry, x_t):
        h, c = carry
        g = x_t @ w_ih + h @ w_hh + b
        i = jax.nn.sigmoid(g[:, 0 * hid:1 * hid])
        f = jax.nn.sigmoid(g[:, 1 * hid:2 * hid])
        gg = jnp.tanh(g[:, 2 * hid:3 * hid])
        o = jax.nn.sigmoid(g[:, 3 * hid:4 * hid])
        c = f * c + i * gg
        h = o * jnp.tanh(c)
        return (h, c), h

    (_, _), hs = jax.lax.scan(step, (h0, c0), x_tm)
    return hs                                        # (T, B, hid)


def reference_forward(x, params):
    B, T, I = x.shape
    H = params["w_hh_e"].shape[0]
    x_tm = jnp.transpose(x, (1, 0, 2))
    enc_hs = _lstm_ref(x_tm, params["w_ih_e"], params["w_hh_e"], params["b_e"], H)
    h_last = enc_hs[-1]
    z = h_last @ params["w_fce"] + params["b_fce"]
    dec_in = z @ params["w_fcd"] + params["b_fcd"]
    dec_x = jnp.broadcast_to(dec_in[None], (T, B, H))
    dec_hs = _lstm_ref(dec_x, params["w_ih_d"], params["w_hh_d"], params["b_d"], I)
    return jnp.transpose(dec_hs, (1, 0, 2))


# ---------------------------------------------------------------------------
# deterministic parameter init (synthetic; PyTorch-style uniform(-k, k)),
# gate-stacked layout: W_* are (in, 4*hid), bias (1, 4*hid), order i,f,g,o.
# ---------------------------------------------------------------------------
def init_params(key, input_size, hidden_size, latent_size):
    ks = jax.random.split(key, 12)
    ke = 1.0 / jnp.sqrt(hidden_size)
    kd = 1.0 / jnp.sqrt(input_size)
    kl = 1.0 / jnp.sqrt(latent_size)
    u = lambda k, shape, s: jax.random.uniform(k, shape, jnp.float32, -s, s)
    return {
        # encoder LSTM (input_size -> hidden_size)
        "w_ih_e": u(ks[0], (input_size, 4 * hidden_size), ke),
        "w_hh_e": u(ks[1], (hidden_size, 4 * hidden_size), ke),
        "b_e":    u(ks[2], (1, 4 * hidden_size), ke)
                + u(ks[3], (1, 4 * hidden_size), ke),        # bias_ih + bias_hh
        # fc_enc / fc_dec
        "w_fce":  u(ks[4], (hidden_size, latent_size), ke),
        "b_fce":  u(ks[5], (1, latent_size), ke),
        "w_fcd":  u(ks[6], (latent_size, hidden_size), kl),
        "b_fcd":  u(ks[7], (1, hidden_size), kl),
        # decoder LSTM (hidden_size -> input_size); its hidden size == input_size
        "w_ih_d": u(ks[8], (hidden_size, 4 * input_size), kd),
        "w_hh_d": u(ks[9], (input_size, 4 * input_size), kd),
        "b_d":    u(ks[10], (1, 4 * input_size), kd)
                + u(ks[11], (1, 4 * input_size), kd),
    }


if __name__ == "__main__":
    B, T = 2, 8
    input_size, hidden_size, latent_size = 16, 32, 8

    key = jax.random.PRNGKey(0)
    kx, kp = jax.random.split(key)
    x = jax.random.normal(kx, (B, T, input_size), jnp.float32)
    params = init_params(kp, input_size, hidden_size, latent_size)

    out = lstm_autoencoder_forward(x, params)
    out = jax.block_until_ready(out)

    ref = reference_forward(x, params)
    assert out.shape == (B, T, input_size), out.shape
    max_err = float(jnp.max(jnp.abs(out - ref)))
    assert jnp.allclose(out, ref, atol=2e-4, rtol=2e-4), max_err

    print("KERNEL_OK")
</pallas_src>

<mosaic_0001>
module attributes {stable_mosaic.version = 11 : i64} {
  func.func @lstm_autoencoder_kernel(%arg0: memref<2x8x16xf32, #tpu.memory_space<vmem>>, %arg1: memref<16x128xf32, #tpu.memory_space<vmem>>, %arg2: memref<32x128xf32, #tpu.memory_space<vmem>>, %arg3: memref<1x128xf32, #tpu.memory_space<vmem>>, %arg4: memref<32x8xf32, #tpu.memory_space<vmem>>, %arg5: memref<1x8xf32, #tpu.memory_space<vmem>>, %arg6: memref<8x32xf32, #tpu.memory_space<vmem>>, %arg7: memref<1x32xf32, #tpu.memory_space<vmem>>, %arg8: memref<32x64xf32, #tpu.memory_space<vmem>>, %arg9: memref<16x64xf32, #tpu.memory_space<vmem>>, %arg10: memref<1x64xf32, #tpu.memory_space<vmem>>, %arg11: memref<2x8x16xf32, #tpu.memory_space<vmem>>) attributes {dimension_semantics = [], scalar_prefetch = 0 : i64, scratch_operands = 0 : i64, tpu.core_type = #tpu.core_type<tc>} {
    %c0 = arith.constant 0 : index
    %c0_0 = arith.constant 0 : index
    %c0_1 = arith.constant 0 : index
    %0 = vector.load %arg0[%c0, %c0_0, %c0_1] : memref<2x8x16xf32, #tpu.memory_space<vmem>>, vector<2x8x16xf32>
    %1 = vector.shape_cast %0 : vector<2x8x16xf32> to vector<16x16xf32>
    %c0_2 = arith.constant 0 : index
    %c0_3 = arith.constant 0 : index
    %2 = vector.load %arg1[%c0_2, %c0_3] : memref<16x128xf32, #tpu.memory_space<vmem>>, vector<16x128xf32>
    %cst = arith.constant dense<0.000000e+00> : vector<16x128xf32>
    %3 = tpu.matmul %1, %2, %cst {dimension_numbers = #tpu.dot_dimension_numbers<[1], [0], [0], [1], [0, 0, 1, 1], [], []>} : vector<16x16xf32>, vector<16x128xf32>, vector<16x128xf32> -> vector<16x128xf32>
    %c0_4 = arith.constant 0 : index
    %c0_5 = arith.constant 0 : index
    %4 = vector.load %arg3[%c0_4, %c0_5] : memref<1x128xf32, #tpu.memory_space<vmem>>, vector<1x128xf32>
    %5 = vector.broadcast %4 : vector<1x128xf32> to vector<16x128xf32>
    %6 = arith.addf %3, %5 : vector<16x128xf32>
    %7 = vector.shape_cast %6 : vector<16x128xf32> to vector<2x8x128xf32>
    %c0_6 = arith.constant 0 : index
    %c0_7 = arith.constant 0 : index
    %8 = vector.load %arg2[%c0_6, %c0_7] : memref<32x128xf32, #tpu.memory_space<vmem>>, vector<32x128xf32>
    %cst_8 = arith.constant 0.000000e+00 : f32
    %9 = vector.broadcast %cst_8 : f32 to vector<2x32xf32>
    %cst_9 = arith.constant 0.000000e+00 : f32
    %10 = vector.broadcast %cst_9 : f32 to vector<2x32xf32>
    %11 = vector.extract_strided_slice %7 {offsets = [0, 0, 0], sizes = [2, 1, 128], strides = [1, 1, 1]} : vector<2x8x128xf32> to vector<2x1x128xf32>
    %12 = vector.shape_cast %11 : vector<2x1x128xf32> to vector<2x128xf32>
    %cst_10 = arith.constant dense<0.000000e+00> : vector<2x128xf32>
    %13 = tpu.matmul %9, %8, %cst_10 {dimension_numbers = #tpu.dot_dimension_numbers<[1], [0], [0], [1], [0, 0, 1, 1], [], []>} : vector<2x32xf32>, vector<32x128xf32>, vector<2x128xf32> -> vector<2x128xf32>
    %14 = arith.addf %12, %13 : vector<2x128xf32>
    %15 = vector.extract_strided_slice %14 {offsets = [0, 0], sizes = [2, 32], strides = [1, 1]} : vector<2x128xf32> to vector<2x32xf32>
    %16 = arith.negf %15 : vector<2x32xf32>
    %17 = math.exp %16 : vector<2x32xf32>
    %cst_11 = arith.constant 1.000000e+00 : f32
    %18 = vector.broadcast %cst_11 : f32 to vector<2x32xf32>
    %19 = arith.addf %18, %17 : vector<2x32xf32>
    %20 = arith.divf %18, %19 : vector<2x32xf32>
    %21 = vector.extract_strided_slice %14 {offsets = [0, 32], sizes = [2, 32], strides = [1, 1]} : vector<2x128xf32> to vector<2x32xf32>
    %22 = arith.negf %21 : vector<2x32xf32>
    %23 = math.exp %22 : vector<2x32xf32>
    %cst_12 = arith.constant 1.000000e+00 : f32
    %24 = vector.broadcast %cst_12 : f32 to vector<2x32xf32>
    %25 = arith.addf %24, %23 : vector<2x32xf32>
    %26 = arith.divf %24, %25 : vector<2x32xf32>
    %27 = vector.extract_strided_slice %14 {offsets = [0, 64], sizes = [2, 32], strides = [1, 1]} : vector<2x128xf32> to vector<2x32xf32>
    %28 = math.tanh %27 : vector<2x32xf32>
    %29 = vector.extract_strided_slice %14 {offsets = [0, 96], sizes = [2, 32], strides = [1, 1]} : vector<2x128xf32> to vector<2x32xf32>
    %30 = arith.negf %29 : vector<2x32xf32>
    %31 = math.exp %30 : vector<2x32xf32>
    %cst_13 = arith.constant 1.000000e+00 : f32
    %32 = vector.broadcast %cst_13 : f32 to vector<2x32xf32>
    %33 = arith.addf %32, %31 : vector<2x32xf32>
    %34 = arith.divf %32, %33 : vector<2x32xf32>
    %35 = arith.mulf %26, %10 : vector<2x32xf32>
    %36 = arith.mulf %20, %28 : vector<2x32xf32>
    %37 = arith.addf %35, %36 : vector<2x32xf32>
    %38 = math.tanh %37 : vector<2x32xf32>
    %39 = arith.mulf %34, %38 : vector<2x32xf32>
    %40 = vector.extract_strided_slice %7 {offsets = [0, 1, 0], sizes = [2, 1, 128], strides = [1, 1, 1]} : vector<2x8x128xf32> to vector<2x1x128xf32>
    %41 = vector.shape_cast %40 : vector<2x1x128xf32> to vector<2x128xf32>
    %cst_14 = arith.constant dense<0.000000e+00> : vector<2x128xf32>
    %42 = tpu.matmul %39, %8, %cst_14 {dimension_numbers = #tpu.dot_dimension_numbers<[1], [0], [0], [1], [0, 0, 1, 1], [], []>} : vector<2x32xf32>, vector<32x128xf32>, vector<2x128xf32> -> vector<2x128xf32>
    %43 = arith.addf %41, %42 : vector<2x128xf32>
    %44 = vector.extract_strided_slice %43 {offsets = [0, 0], sizes = [2, 32], strides = [1, 1]} : vector<2x128xf32> to vector<2x32xf32>
    %45 = arith.negf %44 : vector<2x32xf32>
    %46 = math.exp %45 : vector<2x32xf32>
    %cst_15 = arith.constant 1.000000e+00 : f32
    %47 = vector.broadcast %cst_15 : f32 to vector<2x32xf32>
    %48 = arith.addf %47, %46 : vector<2x32xf32>
    %49 = arith.divf %47, %48 : vector<2x32xf32>
    %50 = vector.extract_strided_slice %43 {offsets = [0, 32], sizes = [2, 32], strides = [1, 1]} : vector<2x128xf32> to vector<2x32xf32>
    %51 = arith.negf %50 : vector<2x32xf32>
    %52 = math.exp %51 : vector<2x32xf32>
    %cst_16 = arith.constant 1.000000e+00 : f32
    %53 = vector.broadcast %cst_16 : f32 to vector<2x32xf32>
    %54 = arith.addf %53, %52 : vector<2x32xf32>
    %55 = arith.divf %53, %54 : vector<2x32xf32>
    %56 = vector.extract_strided_slice %43 {offsets = [0, 64], sizes = [2, 32], strides = [1, 1]} : vector<2x128xf32> to vector<2x32xf32>
    %57 = math.tanh %56 : vector<2x32xf32>
    %58 = vector.extract_strided_slice %43 {offsets = [0, 96], sizes = [2, 32], strides = [1, 1]} : vector<2x128xf32> to vector<2x32xf32>
    %59 = arith.negf %58 : vector<2x32xf32>
    %60 = math.exp %59 : vector<2x32xf32>
    %cst_17 = arith.constant 1.000000e+00 : f32
    %61 = vector.broadcast %cst_17 : f32 to vector<2x32xf32>
    %62 = arith.addf %61, %60 : vector<2x32xf32>
    %63 = arith.divf %61, %62 : vector<2x32xf32>
    %64 = arith.mulf %55, %37 : vector<2x32xf32>
    %65 = arith.mulf %49, %57 : vector<2x32xf32>
    %66 = arith.addf %64, %65 : vector<2x32xf32>
    %67 = math.tanh %66 : vector<2x32xf32>
    %68 = arith.mulf %63, %67 : vector<2x32xf32>
    %69 = vector.extract_strided_slice %7 {offsets = [0, 2, 0], sizes = [2, 1, 128], strides = [1, 1, 1]} : vector<2x8x128xf32> to vector<2x1x128xf32>
    %70 = vector.shape_cast %69 : vector<2x1x128xf32> to vector<2x128xf32>
    %cst_18 = arith.constant dense<0.000000e+00> : vector<2x128xf32>
    %71 = tpu.matmul %68, %8, %cst_18 {dimension_numbers = #tpu.dot_dimension_numbers<[1], [0], [0], [1], [0, 0, 1, 1], [], []>} : vector<2x32xf32>, vector<32x128xf32>, vector<2x128xf32> -> vector<2x128xf32>
    %72 = arith.addf %70, %71 : vector<2x128xf32>
    %73 = vector.extract_strided_slice %72 {offsets = [0, 0], sizes = [2, 32], strides = [1, 1]} : vector<2x128xf32> to vector<2x32xf32>
    %74 = arith.negf %73 : vector<2x32xf32>
    %75 = math.exp %74 : vector<2x32xf32>
    %cst_19 = arith.constant 1.000000e+00 : f32
    %76 = vector.broadcast %cst_19 : f32 to vector<2x32xf32>
    %77 = arith.addf %76, %75 : vector<2x32xf32>
    %78 = arith.divf %76, %77 : vector<2x32xf32>
    %79 = vector.extract_strided_slice %72 {offsets = [0, 32], sizes = [2, 32], strides = [1, 1]} : vector<2x128xf32> to vector<2x32xf32>
    %80 = arith.negf %79 : vector<2x32xf32>
    %81 = math.exp %80 : vector<2x32xf32>
    %cst_20 = arith.constant 1.000000e+00 : f32
    %82 = vector.broadcast %cst_20 : f32 to vector<2x32xf32>
    %83 = arith.addf %82, %81 : vector<2x32xf32>
    %84 = arith.divf %82, %83 : vector<2x32xf32>
    %85 = vector.extract_strided_slice %72 {offsets = [0, 64], sizes = [2, 32], strides = [1, 1]} : vector<2x128xf32> to vector<2x32xf32>
    %86 = math.tanh %85 : vector<2x32xf32>
    %87 = vector.extract_strided_slice %72 {offsets = [0, 96], sizes = [2, 32], strides = [1, 1]} : vector<2x128xf32> to vector<2x32xf32>
    %88 = arith.negf %87 : vector<2x32xf32>
    %89 = math.exp %88 : vector<2x32xf32>
    %cst_21 = arith.constant 1.000000e+00 : f32
    %90 = vector.broadcast %cst_21 : f32 to vector<2x32xf32>
    %91 = arith.addf %90, %89 : vector<2x32xf32>
    %92 = arith.divf %90, %91 : vector<2x32xf32>
    %93 = arith.mulf %84, %66 : vector<2x32xf32>
    %94 = arith.mulf %78, %86 : vector<2x32xf32>
    %95 = arith.addf %93, %94 : vector<2x32xf32>
    %96 = math.tanh %95 : vector<2x32xf32>
    %97 = arith.mulf %92, %96 : vector<2x32xf32>
    %98 = vector.extract_strided_slice %7 {offsets = [0, 3, 0], sizes = [2, 1, 128], strides = [1, 1, 1]} : vector<2x8x128xf32> to vector<2x1x128xf32>
    %99 = vector.shape_cast %98 : vector<2x1x128xf32> to vector<2x128xf32>
    %cst_22 = arith.constant dense<0.000000e+00> : vector<2x128xf32>
    %100 = tpu.matmul %97, %8, %cst_22 {dimension_numbers = #tpu.dot_dimension_numbers<[1], [0], [0], [1], [0, 0, 1, 1], [], []>} : vector<2x32xf32>, vector<32x128xf32>, vector<2x128xf32> -> vector<2x128xf32>
    %101 = arith.addf %99, %100 : vector<2x128xf32>
    %102 = vector.extract_strided_slice %101 {offsets = [0, 0], sizes = [2, 32], strides = [1, 1]} : vector<2x128xf32> to vector<2x32xf32>
    %103 = arith.negf %102 : vector<2x32xf32>
    %104 = math.exp %103 : vector<2x32xf32>
    %cst_23 = arith.constant 1.000000e+00 : f32
    %105 = vector.broadcast %cst_23 : f32 to vector<2x32xf32>
    %106 = arith.addf %105, %104 : vector<2x32xf32>
    %107 = arith.divf %105, %106 : vector<2x32xf32>
    %108 = vector.extract_strided_slice %101 {offsets = [0, 32], sizes = [2, 32], strides = [1, 1]} : vector<2x128xf32> to vector<2x32xf32>
    %109 = arith.negf %108 : vector<2x32xf32>
    %110 = math.exp %109 : vector<2x32xf32>
    %cst_24 = arith.constant 1.000000e+00 : f32
    %111 = vector.broadcast %cst_24 : f32 to vector<2x32xf32>
    %112 = arith.addf %111, %110 : vector<2x32xf32>
    %113 = arith.divf %111, %112 : vector<2x32xf32>
    %114 = vector.extract_strided_slice %101 {offsets = [0, 64], sizes = [2, 32], strides = [1, 1]} : vector<2x128xf32> to vector<2x32xf32>
    %115 = math.tanh %114 : vector<2x32xf32>
    %116 = vector.extract_strided_slice %101 {offsets = [0, 96], sizes = [2, 32], strides = [1, 1]} : vector<2x128xf32> to vector<2x32xf32>
    %117 = arith.negf %116 : vector<2x32xf32>
    %118 = math.exp %117 : vector<2x32xf32>
    %cst_25 = arith.constant 1.000000e+00 : f32
    %119 = vector.broadcast %cst_25 : f32 to vector<2x32xf32>
    %120 = arith.addf %119, %118 : vector<2x32xf32>
    %121 = arith.divf %119, %120 : vector<2x32xf32>
    %122 = arith.mulf %113, %95 : vector<2x32xf32>
    %123 = arith.mulf %107, %115 : vector<2x32xf32>
    %124 = arith.addf %122, %123 : vector<2x32xf32>
    %125 = math.tanh %124 : vector<2x32xf32>
    %126 = arith.mulf %121, %125 : vector<2x32xf32>
    %127 = vector.extract_strided_slice %7 {offsets = [0, 4, 0], sizes = [2, 1, 128], strides = [1, 1, 1]} : vector<2x8x128xf32> to vector<2x1x128xf32>
    %128 = vector.shape_cast %127 : vector<2x1x128xf32> to vector<2x128xf32>
    %cst_26 = arith.constant dense<0.000000e+00> : vector<2x128xf32>
    %129 = tpu.matmul %126, %8, %cst_26 {dimension_numbers = #tpu.dot_dimension_numbers<[1], [0], [0], [1], [0, 0, 1, 1], [], []>} : vector<2x32xf32>, vector<32x128xf32>, vector<2x128xf32> -> vector<2x128xf32>
    %130 = arith.addf %128, %129 : vector<2x128xf32>
    %131 = vector.extract_strided_slice %130 {offsets = [0, 0], sizes = [2, 32], strides = [1, 1]} : vector<2x128xf32> to vector<2x32xf32>
    %132 = arith.negf %131 : vector<2x32xf32>
    %133 = math.exp %132 : vector<2x32xf32>
    %cst_27 = arith.constant 1.000000e+00 : f32
    %134 = vector.broadcast %cst_27 : f32 to vector<2x32xf32>
    %135 = arith.addf %134, %133 : vector<2x32xf32>
    %136 = arith.divf %134, %135 : vector<2x32xf32>
    %137 = vector.extract_strided_slice %130 {offsets = [0, 32], sizes = [2, 32], strides = [1, 1]} : vector<2x128xf32> to vector<2x32xf32>
    %138 = arith.negf %137 : vector<2x32xf32>
    %139 = math.exp %138 : vector<2x32xf32>
    %cst_28 = arith.constant 1.000000e+00 : f32
    %140 = vector.broadcast %cst_28 : f32 to vector<2x32xf32>
    %141 = arith.addf %140, %139 : vector<2x32xf32>
    %142 = arith.divf %140, %141 : vector<2x32xf32>
    %143 = vector.extract_strided_slice %130 {offsets = [0, 64], sizes = [2, 32], strides = [1, 1]} : vector<2x128xf32> to vector<2x32xf32>
    %144 = math.tanh %143 : vector<2x32xf32>
    %145 = vector.extract_strided_slice %130 {offsets = [0, 96], sizes = [2, 32], strides = [1, 1]} : vector<2x128xf32> to vector<2x32xf32>
    %146 = arith.negf %145 : vector<2x32xf32>
    %147 = math.exp %146 : vector<2x32xf32>
    %cst_29 = arith.constant 1.000000e+00 : f32
    %148 = vector.broadcast %cst_29 : f32 to vector<2x32xf32>
    %149 = arith.addf %148, %147 : vector<2x32xf32>
    %150 = arith.divf %148, %149 : vector<2x32xf32>
    %151 = arith.mulf %142, %124 : vector<2x32xf32>
    %152 = arith.mulf %136, %144 : vector<2x32xf32>
    %153 = arith.addf %151, %152 : vector<2x32xf32>
    %154 = math.tanh %153 : vector<2x32xf32>
    %155 = arith.mulf %150, %154 : vector<2x32xf32>
    %156 = vector.extract_strided_slice %7 {offsets = [0, 5, 0], sizes = [2, 1, 128], strides = [1, 1, 1]} : vector<2x8x128xf32> to vector<2x1x128xf32>
    %157 = vector.shape_cast %156 : vector<2x1x128xf32> to vector<2x128xf32>
    %cst_30 = arith.constant dense<0.000000e+00> : vector<2x128xf32>
    %158 = tpu.matmul %155, %8, %cst_30 {dimension_numbers = #tpu.dot_dimension_numbers<[1], [0], [0], [1], [0, 0, 1, 1], [], []>} : vector<2x32xf32>, vector<32x128xf32>, vector<2x128xf32> -> vector<2x128xf32>
    %159 = arith.addf %157, %158 : vector<2x128xf32>
    %160 = vector.extract_strided_slice %159 {offsets = [0, 0], sizes = [2, 32], strides = [1, 1]} : vector<2x128xf32> to vector<2x32xf32>
    %161 = arith.negf %160 : vector<2x32xf32>
    %162 = math.exp %161 : vector<2x32xf32>
    %cst_31 = arith.constant 1.000000e+00 : f32
    %163 = vector.broadcast %cst_31 : f32 to vector<2x32xf32>
    %164 = arith.addf %163, %162 : vector<2x32xf32>
    %165 = arith.divf %163, %164 : vector<2x32xf32>
    %166 = vector.extract_strided_slice %159 {offsets = [0, 32], sizes = [2, 32], strides = [1, 1]} : vector<2x128xf32> to vector<2x32xf32>
    %167 = arith.negf %166 : vector<2x32xf32>
    %168 = math.exp %167 : vector<2x32xf32>
    %cst_32 = arith.constant 1.000000e+00 : f32
    %169 = vector.broadcast %cst_32 : f32 to vector<2x32xf32>
    %170 = arith.addf %169, %168 : vector<2x32xf32>
    %171 = arith.divf %169, %170 : vector<2x32xf32>
    %172 = vector.extract_strided_slice %159 {offsets = [0, 64], sizes = [2, 32], strides = [1, 1]} : vector<2x128xf32> to vector<2x32xf32>
    %173 = math.tanh %172 : vector<2x32xf32>
    %174 = vector.extract_strided_slice %159 {offsets = [0, 96], sizes = [2, 32], strides = [1, 1]} : vector<2x128xf32> to vector<2x32xf32>
    %175 = arith.negf %174 : vector<2x32xf32>
    %176 = math.exp %175 : vector<2x32xf32>
    %cst_33 = arith.constant 1.000000e+00 : f32
    %177 = vector.broadcast %cst_33 : f32 to vector<2x32xf32>
    %178 = arith.addf %177, %176 : vector<2x32xf32>
    %179 = arith.divf %177, %178 : vector<2x32xf32>
    %180 = arith.mulf %171, %153 : vector<2x32xf32>
    %181 = arith.mulf %165, %173 : vector<2x32xf32>
    %182 = arith.addf %180, %181 : vector<2x32xf32>
    %183 = math.tanh %182 : vector<2x32xf32>
    %184 = arith.mulf %179, %183 : vector<2x32xf32>
    %185 = vector.extract_strided_slice %7 {offsets = [0, 6, 0], sizes = [2, 1, 128], strides = [1, 1, 1]} : vector<2x8x128xf32> to vector<2x1x128xf32>
    %186 = vector.shape_cast %185 : vector<2x1x128xf32> to vector<2x128xf32>
    %cst_34 = arith.constant dense<0.000000e+00> : vector<2x128xf32>
    %187 = tpu.matmul %184, %8, %cst_34 {dimension_numbers = #tpu.dot_dimension_numbers<[1], [0], [0], [1], [0, 0, 1, 1], [], []>} : vector<2x32xf32>, vector<32x128xf32>, vector<2x128xf32> -> vector<2x128xf32>
    %188 = arith.addf %186, %187 : vector<2x128xf32>
    %189 = vector.extract_strided_slice %188 {offsets = [0, 0], sizes = [2, 32], strides = [1, 1]} : vector<2x128xf32> to vector<2x32xf32>
    %190 = arith.negf %189 : vector<2x32xf32>
    %191 = math.exp %190 : vector<2x32xf32>
    %cst_35 = arith.constant 1.000000e+00 : f32
    %192 = vector.broadcast %cst_35 : f32 to vector<2x32xf32>
    %193 = arith.addf %192, %191 : vector<2x32xf32>
    %194 = arith.divf %192, %193 : vector<2x32xf32>
    %195 = vector.extract_strided_slice %188 {offsets = [0, 32], sizes = [2, 32], strides = [1, 1]} : vector<2x128xf32> to vector<2x32xf32>
    %196 = arith.negf %195 : vector<2x32xf32>
    %197 = math.exp %196 : vector<2x32xf32>
    %cst_36 = arith.constant 1.000000e+00 : f32
    %198 = vector.broadcast %cst_36 : f32 to vector<2x32xf32>
    %199 = arith.addf %198, %197 : vector<2x32xf32>
    %200 = arith.divf %198, %199 : vector<2x32xf32>
    %201 = vector.extract_strided_slice %188 {offsets = [0, 64], sizes = [2, 32], strides = [1, 1]} : vector<2x128xf32> to vector<2x32xf32>
    %202 = math.tanh %201 : vector<2x32xf32>
    %203 = vector.extract_strided_slice %188 {offsets = [0, 96], sizes = [2, 32], strides = [1, 1]} : vector<2x128xf32> to vector<2x32xf32>
    %204 = arith.negf %203 : vector<2x32xf32>
    %205 = math.exp %204 : vector<2x32xf32>
    %cst_37 = arith.constant 1.000000e+00 : f32
    %206 = vector.broadcast %cst_37 : f32 to vector<2x32xf32>
    %207 = arith.addf %206, %205 : vector<2x32xf32>
    %208 = arith.divf %206, %207 : vector<2x32xf32>
    %209 = arith.mulf %200, %182 : vector<2x32xf32>
    %210 = arith.mulf %194, %202 : vector<2x32xf32>
    %211 = arith.addf %209, %210 : vector<2x32xf32>
    %212 = math.tanh %211 : vector<2x32xf32>
    %213 = arith.mulf %208, %212 : vector<2x32xf32>
    %214 = vector.extract_strided_slice %7 {offsets = [0, 7, 0], sizes = [2, 1, 128], strides = [1, 1, 1]} : vector<2x8x128xf32> to vector<2x1x128xf32>
    %215 = vector.shape_cast %214 : vector<2x1x128xf32> to vector<2x128xf32>
    %cst_38 = arith.constant dense<0.000000e+00> : vector<2x128xf32>
    %216 = tpu.matmul %213, %8, %cst_38 {dimension_numbers = #tpu.dot_dimension_numbers<[1], [0], [0], [1], [0, 0, 1, 1], [], []>} : vector<2x32xf32>, vector<32x128xf32>, vector<2x128xf32> -> vector<2x128xf32>
    %217 = arith.addf %215, %216 : vector<2x128xf32>
    %218 = vector.extract_strided_slice %217 {offsets = [0, 0], sizes = [2, 32], strides = [1, 1]} : vector<2x128xf32> to vector<2x32xf32>
    %219 = arith.negf %218 : vector<2x32xf32>
    %220 = math.exp %219 : vector<2x32xf32>
    %cst_39 = arith.constant 1.000000e+00 : f32
    %221 = vector.broadcast %cst_39 : f32 to vector<2x32xf32>
    %222 = arith.addf %221, %220 : vector<2x32xf32>
    %223 = arith.divf %221, %222 : vector<2x32xf32>
    %224 = vector.extract_strided_slice %217 {offsets = [0, 32], sizes = [2, 32], strides = [1, 1]} : vector<2x128xf32> to vector<2x32xf32>
    %225 = arith.negf %224 : vector<2x32xf32>
    %226 = math.exp %225 : vector<2x32xf32>
    %cst_40 = arith.constant 1.000000e+00 : f32
    %227 = vector.broadcast %cst_40 : f32 to vector<2x32xf32>
    %228 = arith.addf %227, %226 : vector<2x32xf32>
    %229 = arith.divf %227, %228 : vector<2x32xf32>
    %230 = vector.extract_strided_slice %217 {offsets = [0, 64], sizes = [2, 32], strides = [1, 1]} : vector<2x128xf32> to vector<2x32xf32>
    %231 = math.tanh %230 : vector<2x32xf32>
    %232 = vector.extract_strided_slice %217 {offsets = [0, 96], sizes = [2, 32], strides = [1, 1]} : vector<2x128xf32> to vector<2x32xf32>
    %233 = arith.negf %232 : vector<2x32xf32>
    %234 = math.exp %233 : vector<2x32xf32>
    %cst_41 = arith.constant 1.000000e+00 : f32
    %235 = vector.broadcast %cst_41 : f32 to vector<2x32xf32>
    %236 = arith.addf %235, %234 : vector<2x32xf32>
    %237 = arith.divf %235, %236 : vector<2x32xf32>
    %238 = arith.mulf %229, %211 : vector<2x32xf32>
    %239 = arith.mulf %223, %231 : vector<2x32xf32>
    %240 = arith.addf %238, %239 : vector<2x32xf32>
    %241 = math.tanh %240 : vector<2x32xf32>
    %242 = arith.mulf %237, %241 : vector<2x32xf32>
    %c0_42 = arith.constant 0 : index
    %c0_43 = arith.constant 0 : index
    %243 = vector.load %arg4[%c0_42, %c0_43] : memref<32x8xf32, #tpu.memory_space<vmem>>, vector<32x8xf32>
    %cst_44 = arith.constant dense<0.000000e+00> : vector<2x8xf32>
    %244 = tpu.matmul %242, %243, %cst_44 {dimension_numbers = #tpu.dot_dimension_numbers<[1], [0], [0], [1], [0, 0, 1, 1], [], []>} : vector<2x32xf32>, vector<32x8xf32>, vector<2x8xf32> -> vector<2x8xf32>
    %c0_45 = arith.constant 0 : index
    %c0_46 = arith.constant 0 : index
    %245 = vector.load %arg5[%c0_45, %c0_46] : memref<1x8xf32, #tpu.memory_space<vmem>>, vector<1x8xf32>
    %246 = vector.broadcast %245 : vector<1x8xf32> to vector<2x8xf32>
    %247 = arith.addf %244, %246 : vector<2x8xf32>
    %c0_47 = arith.constant 0 : index
    %c0_48 = arith.constant 0 : index
    %248 = vector.load %arg6[%c0_47, %c0_48] : memref<8x32xf32, #tpu.memory_space<vmem>>, vector<8x32xf32>
    %cst_49 = arith.constant dense<0.000000e+00> : vector<2x32xf32>
    %249 = tpu.matmul %247, %248, %cst_49 {dimension_numbers = #tpu.dot_dimension_numbers<[1], [0], [0], [1], [0, 0, 1, 1], [], []>} : vector<2x8xf32>, vector<8x32xf32>, vector<2x32xf32> -> vector<2x32xf32>
    %c0_50 = arith.constant 0 : index
    %c0_51 = arith.constant 0 : index
    %250 = vector.load %arg7[%c0_50, %c0_51] : memref<1x32xf32, #tpu.memory_space<vmem>>, vector<1x32xf32>
    %251 = vector.broadcast %250 : vector<1x32xf32> to vector<2x32xf32>
    %252 = arith.addf %249, %251 : vector<2x32xf32>
    %c0_52 = arith.constant 0 : index
    %c0_53 = arith.constant 0 : index
    %253 = vector.load %arg8[%c0_52, %c0_53] : memref<32x64xf32, #tpu.memory_space<vmem>>, vector<32x64xf32>
    %cst_54 = arith.constant dense<0.000000e+00> : vector<2x64xf32>
    %254 = tpu.matmul %252, %253, %cst_54 {dimension_numbers = #tpu.dot_dimension_numbers<[1], [0], [0], [1], [0, 0, 1, 1], [], []>} : vector<2x32xf32>, vector<32x64xf32>, vector<2x64xf32> -> vector<2x64xf32>
    %c0_55 = arith.constant 0 : index
    %c0_56 = arith.constant 0 : index
    %255 = vector.load %arg10[%c0_55, %c0_56] : memref<1x64xf32, #tpu.memory_space<vmem>>, vector<1x64xf32>
    %256 = vector.broadcast %255 : vector<1x64xf32> to vector<2x64xf32>
    %257 = arith.addf %254, %256 : vector<2x64xf32>
    %c0_57 = arith.constant 0 : index
    %c0_58 = arith.constant 0 : index
    %258 = vector.load %arg9[%c0_57, %c0_58] : memref<16x64xf32, #tpu.memory_space<vmem>>, vector<16x64xf32>
    %cst_59 = arith.constant 0.000000e+00 : f32
    %259 = vector.broadcast %cst_59 : f32 to vector<2x16xf32>
    %cst_60 = arith.constant 0.000000e+00 : f32
    %260 = vector.broadcast %cst_60 : f32 to vector<2x16xf32>
    %cst_61 = arith.constant dense<0.000000e+00> : vector<2x64xf32>
    %261 = tpu.matmul %259, %258, %cst_61 {dimension_numbers = #tpu.dot_dimension_numbers<[1], [0], [0], [1], [0, 0, 1, 1], [], []>} : vector<2x16xf32>, vector<16x64xf32>, vector<2x64xf32> -> vector<2x64xf32>
    %262 = arith.addf %257, %261 : vector<2x64xf32>
    %263 = vector.extract_strided_slice %262 {offsets = [0, 0], sizes = [2, 16], strides = [1, 1]} : vector<2x64xf32> to vector<2x16xf32>
    %264 = arith.negf %263 : vector<2x16xf32>
    %265 = math.exp %264 : vector<2x16xf32>
    %cst_62 = arith.constant 1.000000e+00 : f32
    %266 = vector.broadcast %cst_62 : f32 to vector<2x16xf32>
    %267 = arith.addf %266, %265 : vector<2x16xf32>
    %268 = arith.divf %266, %267 : vector<2x16xf32>
    %269 = vector.extract_strided_slice %262 {offsets = [0, 16], sizes = [2, 16], strides = [1, 1]} : vector<2x64xf32> to vector<2x16xf32>
    %270 = arith.negf %269 : vector<2x16xf32>
    %271 = math.exp %270 : vector<2x16xf32>
    %cst_63 = arith.constant 1.000000e+00 : f32
    %272 = vector.broadcast %cst_63 : f32 to vector<2x16xf32>
    %273 = arith.addf %272, %271 : vector<2x16xf32>
    %274 = arith.divf %272, %273 : vector<2x16xf32>
    %275 = vector.extract_strided_slice %262 {offsets = [0, 32], sizes = [2, 16], strides = [1, 1]} : vector<2x64xf32> to vector<2x16xf32>
    %276 = math.tanh %275 : vector<2x16xf32>
    %277 = vector.extract_strided_slice %262 {offsets = [0, 48], sizes = [2, 16], strides = [1, 1]} : vector<2x64xf32> to vector<2x16xf32>
    %278 = arith.negf %277 : vector<2x16xf32>
    %279 = math.exp %278 : vector<2x16xf32>
    %cst_64 = arith.constant 1.000000e+00 : f32
    %280 = vector.broadcast %cst_64 : f32 to vector<2x16xf32>
    %281 = arith.addf %280, %279 : vector<2x16xf32>
    %282 = arith.divf %280, %281 : vector<2x16xf32>
    %283 = arith.mulf %274, %260 : vector<2x16xf32>
    %284 = arith.mulf %268, %276 : vector<2x16xf32>
    %285 = arith.addf %283, %284 : vector<2x16xf32>
    %286 = math.tanh %285 : vector<2x16xf32>
    %287 = arith.mulf %282, %286 : vector<2x16xf32>
    %c0_65 = arith.constant 0 : index
    %c0_66 = arith.constant 0 : index
    %c0_67 = arith.constant 0 : index
    %288 = vector.load %arg11[%c0_65, %c0_66, %c0_67] : memref<2x8x16xf32, #tpu.memory_space<vmem>>, vector<2x1x16xf32>
    %289 = vector.shape_cast %288 : vector<2x1x16xf32> to vector<2x16xf32>
    %290 = vector.shape_cast %287 : vector<2x16xf32> to vector<2x1x16xf32>
    tpu.vector_store %arg11[%c0_65, %c0_66, %c0_67], %290 {strides = array<i32>} : memref<2x8x16xf32, #tpu.memory_space<vmem>>, vector<2x1x16xf32>,
    %cst_68 = arith.constant dense<0.000000e+00> : vector<2x64xf32>
    %291 = tpu.matmul %287, %258, %cst_68 {dimension_numbers = #tpu.dot_dimension_numbers<[1], [0], [0], [1], [0, 0, 1, 1], [], []>} : vector<2x16xf32>, vector<16x64xf32>, vector<2x64xf32> -> vector<2x64xf32>
    %292 = arith.addf %257, %291 : vector<2x64xf32>
    %293 = vector.extract_strided_slice %292 {offsets = [0, 0], sizes = [2, 16], strides = [1, 1]} : vector<2x64xf32> to vector<2x16xf32>
    %294 = arith.negf %293 : vector<2x16xf32>
    %295 = math.exp %294 : vector<2x16xf32>
    %cst_69 = arith.constant 1.000000e+00 : f32
    %296 = vector.broadcast %cst_69 : f32 to vector<2x16xf32>
    %297 = arith.addf %296, %295 : vector<2x16xf32>
    %298 = arith.divf %296, %297 : vector<2x16xf32>
    %299 = vector.extract_strided_slice %292 {offsets = [0, 16], sizes = [2, 16], strides = [1, 1]} : vector<2x64xf32> to vector<2x16xf32>
    %300 = arith.negf %299 : vector<2x16xf32>
    %301 = math.exp %300 : vector<2x16xf32>
    %cst_70 = arith.constant 1.000000e+00 : f32
    %302 = vector.broadcast %cst_70 : f32 to vector<2x16xf32>
    %303 = arith.addf %302, %301 : vector<2x16xf32>
    %304 = arith.divf %302, %303 : vector<2x16xf32>
    %305 = vector.extract_strided_slice %292 {offsets = [0, 32], sizes = [2, 16], strides = [1, 1]} : vector<2x64xf32> to vector<2x16xf32>
    %306 = math.tanh %305 : vector<2x16xf32>
    %307 = vector.extract_strided_slice %292 {offsets = [0, 48], sizes = [2, 16], strides = [1, 1]} : vector<2x64xf32> to vector<2x16xf32>
    %308 = arith.negf %307 : vector<2x16xf32>
    %309 = math.exp %308 : vector<2x16xf32>
    %cst_71 = arith.constant 1.000000e+00 : f32
    %310 = vector.broadcast %cst_71 : f32 to vector<2x16xf32>
    %311 = arith.addf %310, %309 : vector<2x16xf32>
    %312 = arith.divf %310, %311 : vector<2x16xf32>
    %313 = arith.mulf %304, %285 : vector<2x16xf32>
    %314 = arith.mulf %298, %306 : vector<2x16xf32>
    %315 = arith.addf %313, %314 : vector<2x16xf32>
    %316 = math.tanh %315 : vector<2x16xf32>
    %317 = arith.mulf %312, %316 : vector<2x16xf32>
    %c0_72 = arith.constant 0 : index
    %c1 = arith.constant 1 : index
    %c0_73 = arith.constant 0 : index
    %318 = vector.load %arg11[%c0_72, %c1, %c0_73] : memref<2x8x16xf32, #tpu.memory_space<vmem>>, vector<2x1x16xf32>
    %319 = vector.shape_cast %318 : vector<2x1x16xf32> to vector<2x16xf32>
    %320 = vector.shape_cast %317 : vector<2x16xf32> to vector<2x1x16xf32>
    tpu.vector_store %arg11[%c0_72, %c1, %c0_73], %320 {strides = array<i32>} : memref<2x8x16xf32, #tpu.memory_space<vmem>>, vector<2x1x16xf32>,
    %cst_74 = arith.constant dense<0.000000e+00> : vector<2x64xf32>
    %321 = tpu.matmul %317, %258, %cst_74 {dimension_numbers = #tpu.dot_dimension_numbers<[1], [0], [0], [1], [0, 0, 1, 1], [], []>} : vector<2x16xf32>, vector<16x64xf32>, vector<2x64xf32> -> vector<2x64xf32>
    %322 = arith.addf %257, %321 : vector<2x64xf32>
    %323 = vector.extract_strided_slice %322 {offsets = [0, 0], sizes = [2, 16], strides = [1, 1]} : vector<2x64xf32> to vector<2x16xf32>
    %324 = arith.negf %323 : vector<2x16xf32>
    %325 = math.exp %324 : vector<2x16xf32>
    %cst_75 = arith.constant 1.000000e+00 : f32
    %326 = vector.broadcast %cst_75 : f32 to vector<2x16xf32>
    %327 = arith.addf %326, %325 : vector<2x16xf32>
    %328 = arith.divf %326, %327 : vector<2x16xf32>
    %329 = vector.extract_strided_slice %322 {offsets = [0, 16], sizes = [2, 16], strides = [1, 1]} : vector<2x64xf32> to vector<2x16xf32>
    %330 = arith.negf %329 : vector<2x16xf32>
    %331 = math.exp %330 : vector<2x16xf32>
    %cst_76 = arith.constant 1.000000e+00 : f32
    %332 = vector.broadcast %cst_76 : f32 to vector<2x16xf32>
    %333 = arith.addf %332, %331 : vector<2x16xf32>
    %334 = arith.divf %332, %333 : vector<2x16xf32>
    %335 = vector.extract_strided_slice %322 {offsets = [0, 32], sizes = [2, 16], strides = [1, 1]} : vector<2x64xf32> to vector<2x16xf32>
    %336 = math.tanh %335 : vector<2x16xf32>
    %337 = vector.extract_strided_slice %322 {offsets = [0, 48], sizes = [2, 16], strides = [1, 1]} : vector<2x64xf32> to vector<2x16xf32>
    %338 = arith.negf %337 : vector<2x16xf32>
    %339 = math.exp %338 : vector<2x16xf32>
    %cst_77 = arith.constant 1.000000e+00 : f32
    %340 = vector.broadcast %cst_77 : f32 to vector<2x16xf32>
    %341 = arith.addf %340, %339 : vector<2x16xf32>
    %342 = arith.divf %340, %341 : vector<2x16xf32>
    %343 = arith.mulf %334, %315 : vector<2x16xf32>
    %344 = arith.mulf %328, %336 : vector<2x16xf32>
    %345 = arith.addf %343, %344 : vector<2x16xf32>
    %346 = math.tanh %345 : vector<2x16xf32>
    %347 = arith.mulf %342, %346 : vector<2x16xf32>
    %c0_78 = arith.constant 0 : index
    %c2 = arith.constant 2 : index
    %c0_79 = arith.constant 0 : index
    %348 = vector.load %arg11[%c0_78, %c2, %c0_79] : memref<2x8x16xf32, #tpu.memory_space<vmem>>, vector<2x1x16xf32>
    %349 = vector.shape_cast %348 : vector<2x1x16xf32> to vector<2x16xf32>
    %350 = vector.shape_cast %347 : vector<2x16xf32> to vector<2x1x16xf32>
    tpu.vector_store %arg11[%c0_78, %c2, %c0_79], %350 {strides = array<i32>} : memref<2x8x16xf32, #tpu.memory_space<vmem>>, vector<2x1x16xf32>,
    %cst_80 = arith.constant dense<0.000000e+00> : vector<2x64xf32>
    %351 = tpu.matmul %347, %258, %cst_80 {dimension_numbers = #tpu.dot_dimension_numbers<[1], [0], [0], [1], [0, 0, 1, 1], [], []>} : vector<2x16xf32>, vector<16x64xf32>, vector<2x64xf32> -> vector<2x64xf32>
    %352 = arith.addf %257, %351 : vector<2x64xf32>
    %353 = vector.extract_strided_slice %352 {offsets = [0, 0], sizes = [2, 16], strides = [1, 1]} : vector<2x64xf32> to vector<2x16xf32>
    %354 = arith.negf %353 : vector<2x16xf32>
    %355 = math.exp %354 : vector<2x16xf32>
    %cst_81 = arith.constant 1.000000e+00 : f32
    %356 = vector.broadcast %cst_81 : f32 to vector<2x16xf32>
    %357 = arith.addf %356, %355 : vector<2x16xf32>
    %358 = arith.divf %356, %357 : vector<2x16xf32>
    %359 = vector.extract_strided_slice %352 {offsets = [0, 16], sizes = [2, 16], strides = [1, 1]} : vector<2x64xf32> to vector<2x16xf32>
    %360 = arith.negf %359 : vector<2x16xf32>
    %361 = math.exp %360 : vector<2x16xf32>
    %cst_82 = arith.constant 1.000000e+00 : f32
    %362 = vector.broadcast %cst_82 : f32 to vector<2x16xf32>
    %363 = arith.addf %362, %361 : vector<2x16xf32>
    %364 = arith.divf %362, %363 : vector<2x16xf32>
    %365 = vector.extract_strided_slice %352 {offsets = [0, 32], sizes = [2, 16], strides = [1, 1]} : vector<2x64xf32> to vector<2x16xf32>
    %366 = math.tanh %365 : vector<2x16xf32>
    %367 = vector.extract_strided_slice %352 {offsets = [0, 48], sizes = [2, 16], strides = [1, 1]} : vector<2x64xf32> to vector<2x16xf32>
    %368 = arith.negf %367 : vector<2x16xf32>
    %369 = math.exp %368 : vector<2x16xf32>
    %cst_83 = arith.constant 1.000000e+00 : f32
    %370 = vector.broadcast %cst_83 : f32 to vector<2x16xf32>
    %371 = arith.addf %370, %369 : vector<2x16xf32>
    %372 = arith.divf %370, %371 : vector<2x16xf32>
    %373 = arith.mulf %364, %345 : vector<2x16xf32>
    %374 = arith.mulf %358, %366 : vector<2x16xf32>
    %375 = arith.addf %373, %374 : vector<2x16xf32>
    %376 = math.tanh %375 : vector<2x16xf32>
    %377 = arith.mulf %372, %376 : vector<2x16xf32>
    %c0_84 = arith.constant 0 : index
    %c3 = arith.constant 3 : index
    %c0_85 = arith.constant 0 : index
    %378 = vector.load %arg11[%c0_84, %c3, %c0_85] : memref<2x8x16xf32, #tpu.memory_space<vmem>>, vector<2x1x16xf32>
    %379 = vector.shape_cast %378 : vector<2x1x16xf32> to vector<2x16xf32>
    %380 = vector.shape_cast %377 : vector<2x16xf32> to vector<2x1x16xf32>
    tpu.vector_store %arg11[%c0_84, %c3, %c0_85], %380 {strides = array<i32>} : memref<2x8x16xf32, #tpu.memory_space<vmem>>, vector<2x1x16xf32>,
    %cst_86 = arith.constant dense<0.000000e+00> : vector<2x64xf32>
    %381 = tpu.matmul %377, %258, %cst_86 {dimension_numbers = #tpu.dot_dimension_numbers<[1], [0], [0], [1], [0, 0, 1, 1], [], []>} : vector<2x16xf32>, vector<16x64xf32>, vector<2x64xf32> -> vector<2x64xf32>
    %382 = arith.addf %257, %381 : vector<2x64xf32>
    %383 = vector.extract_strided_slice %382 {offsets = [0, 0], sizes = [2, 16], strides = [1, 1]} : vector<2x64xf32> to vector<2x16xf32>
    %384 = arith.negf %383 : vector<2x16xf32>
    %385 = math.exp %384 : vector<2x16xf32>
    %cst_87 = arith.constant 1.000000e+00 : f32
    %386 = vector.broadcast %cst_87 : f32 to vector<2x16xf32>
    %387 = arith.addf %386, %385 : vector<2x16xf32>
    %388 = arith.divf %386, %387 : vector<2x16xf32>
    %389 = vector.extract_strided_slice %382 {offsets = [0, 16], sizes = [2, 16], strides = [1, 1]} : vector<2x64xf32> to vector<2x16xf32>
    %390 = arith.negf %389 : vector<2x16xf32>
    %391 = math.exp %390 : vector<2x16xf32>
    %cst_88 = arith.constant 1.000000e+00 : f32
    %392 = vector.broadcast %cst_88 : f32 to vector<2x16xf32>
    %393 = arith.addf %392, %391 : vector<2x16xf32>
    %394 = arith.divf %392, %393 : vector<2x16xf32>
    %395 = vector.extract_strided_slice %382 {offsets = [0, 32], sizes = [2, 16], strides = [1, 1]} : vector<2x64xf32> to vector<2x16xf32>
    %396 = math.tanh %395 : vector<2x16xf32>
    %397 = vector.extract_strided_slice %382 {offsets = [0, 48], sizes = [2, 16], strides = [1, 1]} : vector<2x64xf32> to vector<2x16xf32>
    %398 = arith.negf %397 : vector<2x16xf32>
    %399 = math.exp %398 : vector<2x16xf32>
    %cst_89 = arith.constant 1.000000e+00 : f32
    %400 = vector.broadcast %cst_89 : f32 to vector<2x16xf32>
    %401 = arith.addf %400, %399 : vector<2x16xf32>
    %402 = arith.divf %400, %401 : vector<2x16xf32>
    %403 = arith.mulf %394, %375 : vector<2x16xf32>
    %404 = arith.mulf %388, %396 : vector<2x16xf32>
    %405 = arith.addf %403, %404 : vector<2x16xf32>
    %406 = math.tanh %405 : vector<2x16xf32>
    %407 = arith.mulf %402, %406 : vector<2x16xf32>
    %c0_90 = arith.constant 0 : index
    %c4 = arith.constant 4 : index
    %c0_91 = arith.constant 0 : index
    %408 = vector.load %arg11[%c0_90, %c4, %c0_91] : memref<2x8x16xf32, #tpu.memory_space<vmem>>, vector<2x1x16xf32>
    %409 = vector.shape_cast %408 : vector<2x1x16xf32> to vector<2x16xf32>
    %410 = vector.shape_cast %407 : vector<2x16xf32> to vector<2x1x16xf32>
    tpu.vector_store %arg11[%c0_90, %c4, %c0_91], %410 {strides = array<i32>} : memref<2x8x16xf32, #tpu.memory_space<vmem>>, vector<2x1x16xf32>,
    %cst_92 = arith.constant dense<0.000000e+00> : vector<2x64xf32>
    %411 = tpu.matmul %407, %258, %cst_92 {dimension_numbers = #tpu.dot_dimension_numbers<[1], [0], [0], [1], [0, 0, 1, 1], [], []>} : vector<2x16xf32>, vector<16x64xf32>, vector<2x64xf32> -> vector<2x64xf32>
    %412 = arith.addf %257, %411 : vector<2x64xf32>
    %413 = vector.extract_strided_slice %412 {offsets = [0, 0], sizes = [2, 16], strides = [1, 1]} : vector<2x64xf32> to vector<2x16xf32>
    %414 = arith.negf %413 : vector<2x16xf32>
    %415 = math.exp %414 : vector<2x16xf32>
    %cst_93 = arith.constant 1.000000e+00 : f32
    %416 = vector.broadcast %cst_93 : f32 to vector<2x16xf32>
    %417 = arith.addf %416, %415 : vector<2x16xf32>
    %418 = arith.divf %416, %417 : vector<2x16xf32>
    %419 = vector.extract_strided_slice %412 {offsets = [0, 16], sizes = [2, 16], strides = [1, 1]} : vector<2x64xf32> to vector<2x16xf32>
    %420 = arith.negf %419 : vector<2x16xf32>
    %421 = math.exp %420 : vector<2x16xf32>
    %cst_94 = arith.constant 1.000000e+00 : f32
    %422 = vector.broadcast %cst_94 : f32 to vector<2x16xf32>
    %423 = arith.addf %422, %421 : vector<2x16xf32>
    %424 = arith.divf %422, %423 : vector<2x16xf32>
    %425 = vector.extract_strided_slice %412 {offsets = [0, 32], sizes = [2, 16], strides = [1, 1]} : vector<2x64xf32> to vector<2x16xf32>
    %426 = math.tanh %425 : vector<2x16xf32>
    %427 = vector.extract_strided_slice %412 {offsets = [0, 48], sizes = [2, 16], strides = [1, 1]} : vector<2x64xf32> to vector<2x16xf32>
    %428 = arith.negf %427 : vector<2x16xf32>
    %429 = math.exp %428 : vector<2x16xf32>
    %cst_95 = arith.constant 1.000000e+00 : f32
    %430 = vector.broadcast %cst_95 : f32 to vector<2x16xf32>
    %431 = arith.addf %430, %429 : vector<2x16xf32>
    %432 = arith.divf %430, %431 : vector<2x16xf32>
    %433 = arith.mulf %424, %405 : vector<2x16xf32>
    %434 = arith.mulf %418, %426 : vector<2x16xf32>
    %435 = arith.addf %433, %434 : vector<2x16xf32>
    %436 = math.tanh %435 : vector<2x16xf32>
    %437 = arith.mulf %432, %436 : vector<2x16xf32>
    %c0_96 = arith.constant 0 : index
    %c5 = arith.constant 5 : index
    %c0_97 = arith.constant 0 : index
    %438 = vector.load %arg11[%c0_96, %c5, %c0_97] : memref<2x8x16xf32, #tpu.memory_space<vmem>>, vector<2x1x16xf32>
    %439 = vector.shape_cast %438 : vector<2x1x16xf32> to vector<2x16xf32>
    %440 = vector.shape_cast %437 : vector<2x16xf32> to vector<2x1x16xf32>
    tpu.vector_store %arg11[%c0_96, %c5, %c0_97], %440 {strides = array<i32>} : memref<2x8x16xf32, #tpu.memory_space<vmem>>, vector<2x1x16xf32>,
    %cst_98 = arith.constant dense<0.000000e+00> : vector<2x64xf32>
    %441 = tpu.matmul %437, %258, %cst_98 {dimension_numbers = #tpu.dot_dimension_numbers<[1], [0], [0], [1], [0, 0, 1, 1], [], []>} : vector<2x16xf32>, vector<16x64xf32>, vector<2x64xf32> -> vector<2x64xf32>
    %442 = arith.addf %257, %441 : vector<2x64xf32>
    %443 = vector.extract_strided_slice %442 {offsets = [0, 0], sizes = [2, 16], strides = [1, 1]} : vector<2x64xf32> to vector<2x16xf32>
    %444 = arith.negf %443 : vector<2x16xf32>
    %445 = math.exp %444 : vector<2x16xf32>
    %cst_99 = arith.constant 1.000000e+00 : f32
    %446 = vector.broadcast %cst_99 : f32 to vector<2x16xf32>
    %447 = arith.addf %446, %445 : vector<2x16xf32>
    %448 = arith.divf %446, %447 : vector<2x16xf32>
    %449 = vector.extract_strided_slice %442 {offsets = [0, 16], sizes = [2, 16], strides = [1, 1]} : vector<2x64xf32> to vector<2x16xf32>
    %450 = arith.negf %449 : vector<2x16xf32>
    %451 = math.exp %450 : vector<2x16xf32>
    %cst_100 = arith.constant 1.000000e+00 : f32
    %452 = vector.broadcast %cst_100 : f32 to vector<2x16xf32>
    %453 = arith.addf %452, %451 : vector<2x16xf32>
    %454 = arith.divf %452, %453 : vector<2x16xf32>
    %455 = vector.extract_strided_slice %442 {offsets = [0, 32], sizes = [2, 16], strides = [1, 1]} : vector<2x64xf32> to vector<2x16xf32>
    %456 = math.tanh %455 : vector<2x16xf32>
    %457 = vector.extract_strided_slice %442 {offsets = [0, 48], sizes = [2, 16], strides = [1, 1]} : vector<2x64xf32> to vector<2x16xf32>
    %458 = arith.negf %457 : vector<2x16xf32>
    %459 = math.exp %458 : vector<2x16xf32>
    %cst_101 = arith.constant 1.000000e+00 : f32
    %460 = vector.broadcast %cst_101 : f32 to vector<2x16xf32>
    %461 = arith.addf %460, %459 : vector<2x16xf32>
    %462 = arith.divf %460, %461 : vector<2x16xf32>
    %463 = arith.mulf %454, %435 : vector<2x16xf32>
    %464 = arith.mulf %448, %456 : vector<2x16xf32>
    %465 = arith.addf %463, %464 : vector<2x16xf32>
    %466 = math.tanh %465 : vector<2x16xf32>
    %467 = arith.mulf %462, %466 : vector<2x16xf32>
    %c0_102 = arith.constant 0 : index
    %c6 = arith.constant 6 : index
    %c0_103 = arith.constant 0 : index
    %468 = vector.load %arg11[%c0_102, %c6, %c0_103] : memref<2x8x16xf32, #tpu.memory_space<vmem>>, vector<2x1x16xf32>
    %469 = vector.shape_cast %468 : vector<2x1x16xf32> to vector<2x16xf32>
    %470 = vector.shape_cast %467 : vector<2x16xf32> to vector<2x1x16xf32>
    tpu.vector_store %arg11[%c0_102, %c6, %c0_103], %470 {strides = array<i32>} : memref<2x8x16xf32, #tpu.memory_space<vmem>>, vector<2x1x16xf32>,
    %cst_104 = arith.constant dense<0.000000e+00> : vector<2x64xf32>
    %471 = tpu.matmul %467, %258, %cst_104 {dimension_numbers = #tpu.dot_dimension_numbers<[1], [0], [0], [1], [0, 0, 1, 1], [], []>} : vector<2x16xf32>, vector<16x64xf32>, vector<2x64xf32> -> vector<2x64xf32>
    %472 = arith.addf %257, %471 : vector<2x64xf32>
    %473 = vector.extract_strided_slice %472 {offsets = [0, 0], sizes = [2, 16], strides = [1, 1]} : vector<2x64xf32> to vector<2x16xf32>
    %474 = arith.negf %473 : vector<2x16xf32>
    %475 = math.exp %474 : vector<2x16xf32>
    %cst_105 = arith.constant 1.000000e+00 : f32
    %476 = vector.broadcast %cst_105 : f32 to vector<2x16xf32>
    %477 = arith.addf %476, %475 : vector<2x16xf32>
    %478 = arith.divf %476, %477 : vector<2x16xf32>
    %479 = vector.extract_strided_slice %472 {offsets = [0, 16], sizes = [2, 16], strides = [1, 1]} : vector<2x64xf32> to vector<2x16xf32>
    %480 = arith.negf %479 : vector<2x16xf32>
    %481 = math.exp %480 : vector<2x16xf32>
    %cst_106 = arith.constant 1.000000e+00 : f32
    %482 = vector.broadcast %cst_106 : f32 to vector<2x16xf32>
    %483 = arith.addf %482, %481 : vector<2x16xf32>
    %484 = arith.divf %482, %483 : vector<2x16xf32>
    %485 = vector.extract_strided_slice %472 {offsets = [0, 32], sizes = [2, 16], strides = [1, 1]} : vector<2x64xf32> to vector<2x16xf32>
    %486 = math.tanh %485 : vector<2x16xf32>
    %487 = vector.extract_strided_slice %472 {offsets = [0, 48], sizes = [2, 16], strides = [1, 1]} : vector<2x64xf32> to vector<2x16xf32>
    %488 = arith.negf %487 : vector<2x16xf32>
    %489 = math.exp %488 : vector<2x16xf32>
    %cst_107 = arith.constant 1.000000e+00 : f32
    %490 = vector.broadcast %cst_107 : f32 to vector<2x16xf32>
    %491 = arith.addf %490, %489 : vector<2x16xf32>
    %492 = arith.divf %490, %491 : vector<2x16xf32>
    %493 = arith.mulf %484, %465 : vector<2x16xf32>
    %494 = arith.mulf %478, %486 : vector<2x16xf32>
    %495 = arith.addf %493, %494 : vector<2x16xf32>
    %496 = math.tanh %495 : vector<2x16xf32>
    %497 = arith.mulf %492, %496 : vector<2x16xf32>
    %c0_108 = arith.constant 0 : index
    %c7 = arith.constant 7 : index
    %c0_109 = arith.constant 0 : index
    %498 = vector.load %arg11[%c0_108, %c7, %c0_109] : memref<2x8x16xf32, #tpu.memory_space<vmem>>, vector<2x1x16xf32>
    %499 = vector.shape_cast %498 : vector<2x1x16xf32> to vector<2x16xf32>
    %500 = vector.shape_cast %497 : vector<2x16xf32> to vector<2x1x16xf32>
    tpu.vector_store %arg11[%c0_108, %c7, %c0_109], %500 {strides = array<i32>} : memref<2x8x16xf32, #tpu.memory_space<vmem>>, vector<2x1x16xf32>,
    return
  }
}

</mosaic_0001>

<bundles_post_ra>
// kernel: lstm_autoencoder_forward.1
= control target key start
LH: loop header
LB: loop body
LE: loop exit
PB: predicated region body
PF: predicated region fallthrough
CT: control target
= control target key end

     0   :  { %16 = vsyncpa [#allocation3], 0  ;;  %s4037_s0 = inlined_call_operand.hbm [shape: f32[2,8,16], index: 0, kind: input, shape index: {}]   ;;  %s4038_s1 = inlined_call_operand.hbm [shape: f32[16,128], index: 1, kind: input, shape index: {}]   ;;  %s4039_s2 = inlined_call_operand.vmem [shape: f32[32,128], index: 2, kind: input, shape index: {}]   ;;  %s4040_s3 = inlined_call_operand.vmem [shape: f32[1,128], index: 3, kind: input, shape index: {}]   ;;  %s4041_s4 = inlined_call_operand.vmem [shape: f32[32,8], index: 4, kind: input, shape index: {}]   ;;  %s4042_s5 = inlined_call_operand.vmem [shape: f32[1,8], index: 5, kind: input, shape index: {}]   ;;  %s4043_s6 = inlined_call_operand.hbm [shape: f32[8,32], index: 6, kind: input, shape index: {}]   ;;  %s4044_s7 = inlined_call_operand.hbm [shape: f32[1,32], index: 7, kind: input, shape index: {}]   ;;  %s4045_s8 = inlined_call_operand.vmem [shape: f32[32,64], index: 8, kind: input, shape index: {}]   ;;  %s4046_s9 = inlined_call_operand.hbm [shape: f32[16,64], index: 9, kind: input, shape index: {}]   ;;  %s4047_s10 = inlined_call_operand.hbm [shape: f32[1,64], index: 10, kind: input, shape index: {}]   ;;  %s4048_s11 = inlined_call_operand.hbm [shape: f32[2,8,16], index: 11, kind: output, shape index: {}]  }
   0x1   :  { %17 = vsyncpa [#allocation6], 0 }
   0x2   :  { %18 = vsyncpa [#allocation9], 0 }
   0x3   :  { %19 = vsyncpa [#allocation12], 0 }
   0x4   :  { %20 = vsyncpa [#allocation4], 0  ;;  %s3466_s17 = smov [#allocation5]   ;;  %s3467_s19 = smov [#allocation8]  }
   0x5   :  { %s38_s18 = sshll.u32 %s3466_s17, 4  ;;  %s69_s20 = sshll.u32 %s3467_s19, 4  ;;  %s39_s18 = int_to_ptr.vmem [resolvable:$true] %s38_s18  ;;  %s3544_s20 = int_to_ptr.vmem [resolvable:$true] %s69_s20 }
   0x6   :  { %s3302_s23 = scalar_lea.hbm %s4038_s1, 256 }
   0x7   :  { %p3303_p0 = scmp.ne.s32.totalorder %s4038_s1, %s3302_s23  ;;  %p3306_p1 = scmp.lt.u32.totalorder %s3302_s23, %s4038_s1 }
   0x9   :  { %p3308_p2 = pnand %p3306_p1, %p3303_p0 }
   0xb   :  { %3311 = shalt.err (!%p3308_p2)
}
   0xc   :  { %s3312_s28 = scalar_lea.vmem %s39_s18, 256  ;;  %p3317_p4 = scmp.lt.s32.totalorder %s39_s18, %s39_s18 }
   0xd   :  { %p3313_p3 = scmp.ne.s32.totalorder %s39_s18, %s3312_s28  ;;  %p3318_p5 = scmp.lt.s32.totalorder %s3312_s28, %s3312_s28 }
   0xf   :  { %p3319_p6 = por %p3318_p5, %p3317_p4 }
  0x11   :  { %p3320_p7 = pnand %p3319_p6, %p3313_p3 }
  0x13   :  { %3323 = shalt.err (!%p3320_p7)
}
  0x14   :  { %s3468_s29 = smov 128   ;;  %s3469_s30 = smov 8  }
  0x15   :  { %44 = dma.hbm_to_vmem [thread:$0]  %s4038_s1, 256, %s39_s18, [#allocation6], %s3468_s29, %s3468_s29, %s3469_s30  }
  0x16   :  { %s3324_s16 = scalar_lea.hbm %s4044_s7, 16 }
  0x17   :  { %p3325_p8 = scmp.ne.s32.totalorder %s4044_s7, %s3324_s16  ;;  %p3328_p9 = scmp.lt.u32.totalorder %s3324_s16, %s4044_s7 }
  0x19   :  { %p3330_p10 = pnand %p3328_p9, %p3325_p8 }
  0x1b   :  { %3333 = shalt.err (!%p3330_p10)
}
  0x1c   :  { %s3334_s23 = scalar_lea.vmem %s3544_s20, 16  ;;  %s3338_s1 = scalar_lea.vmem %s3544_s20, 32 }
  0x1d   :  { %p3335_p11 = scmp.ne.s32.totalorder %s3544_s20, %s3334_s23  ;;  %p3339_p12 = scmp.lt.s32.totalorder %s3544_s20, %s3544_s20 }
  0x1e   :  { %p3340_p13 = scmp.lt.s32.totalorder %s3338_s1, %s3334_s23 }
  0x20   :  { %p3341_p0 = por %p3340_p13, %p3339_p12 }
  0x22   :  { %p3342_p1 = pnand %p3341_p0, %p3335_p11 }
  0x24   :  { %3345 = shalt.err (!%p3342_p1)
}
  0x25   :  { %72 = dma.hbm_to_vmem [thread:$0]  %s4044_s7, 16, %s3544_s20, [#allocation9]  }
  0x26   :  { %s3470_s25 = smov [#allocation2]   ;;  %s3471_s27 = smov [#allocation7]  }
  0x27   :  { %s26_s26 = sshll.u32 %s3470_s25, 4  ;;  %s59_s28 = sshll.u32 %s3471_s27, 4  ;;  %s27_s26 = int_to_ptr.vmem [resolvable:$true] %s26_s26  ;;  %s60_s28 = int_to_ptr.vmem [resolvable:$true] %s59_s28 }
  0x28   :  { %s3346_s14 = scalar_lea.hbm %s4037_s0, 256 }
  0x29   :  { %p3347_p2 = scmp.ne.s32.totalorder %s4037_s0, %s3346_s14  ;;  %p3350_p3 = scmp.lt.u32.totalorder %s3346_s14, %s4037_s0 }
  0x2b   :  { %p3352_p4 = pnand %p3350_p3, %p3347_p2 }
  0x2d   :  { %3355 = shalt.err (!%p3352_p4)
}
  0x2e   :  { %s3356_s7 = scalar_lea.vmem %s27_s26, 256  ;;  %p3361_p6 = scmp.lt.s32.totalorder %s27_s26, %s27_s26 }
  0x2f   :  { %p3357_p5 = scmp.ne.s32.totalorder %s27_s26, %s3356_s7  ;;  %p3362_p7 = scmp.lt.s32.totalorder %s3356_s7, %s3356_s7 }
  0x31   :  { %p3363_p8 = por %p3362_p7, %p3361_p6 }
  0x33   :  { %p3364_p9 = pnand %p3363_p8, %p3357_p5 }
  0x35   :  { %3367 = shalt.err (!%p3364_p9)
}
  0x36   :  { %32 = dma.hbm_to_vmem [thread:$0]  %s4037_s0, 256, %s27_s26, [#allocation3], %s3468_s29, %s3468_s29, %s3469_s30  }
  0x37   :  { %s3368_s1 = scalar_lea.hbm %s4043_s6, 128 }
  0x38   :  { %p3369_p10 = scmp.ne.s32.totalorder %s4043_s6, %s3368_s1  ;;  %p3372_p11 = scmp.lt.u32.totalorder %s3368_s1, %s4043_s6 }
  0x3a   :  { %p3374_p12 = pnand %p3372_p11, %p3369_p10 }
  0x3c   :  { %3377 = shalt.err (!%p3374_p12)
}
  0x3d   :  { %s3378_s12 = scalar_lea.vmem %s60_s28, 128  ;;  %p3383_p0 = scmp.lt.s32.totalorder %s60_s28, %s60_s28 }
  0x3e   :  { %p3379_p13 = scmp.ne.s32.totalorder %s60_s28, %s3378_s12  ;;  %p3384_p1 = scmp.lt.s32.totalorder %s3378_s12, %s3378_s12 }
  0x40   :  { %p3385_p2 = por %p3384_p1, %p3383_p0 }
  0x42   :  { %p3386_p3 = pnand %p3385_p2, %p3379_p13 }
  0x44   :  { %3389 = shalt.err (!%p3386_p3)
}
  0x45   :  { %62 = dma.hbm_to_vmem [thread:$0]  %s4043_s6, 128, %s60_s28, [#allocation6]  }
  0x46   :  { %s3472_s13 = smov [#allocation10]   ;;  %s3473_s15 = smov [#allocation11]  }
  0x47   :  { %s80_s14 = sshll.u32 %s3472_s13, 4  ;;  %s93_s16 = sshll.u32 %s3473_s15, 4  ;;  %s81_s14 = int_to_ptr.vmem [resolvable:$true] %s80_s14  ;;  %s94_s16 = int_to_ptr.vmem [resolvable:$true] %s93_s16 }
  0x48   :  { %s3390_s7 = scalar_lea.hbm %s4046_s9, 256 }
  0x49   :  { %p3391_p4 = scmp.ne.s32.totalorder %s4046_s9, %s3390_s7  ;;  %p3394_p5 = scmp.lt.u32.totalorder %s3390_s7, %s4046_s9 }
  0x4b   :  { %p3396_p6 = pnand %p3394_p5, %p3391_p4 }
  0x4d   :  { %3399 = shalt.err (!%p3396_p6)
}
  0x4e   :  { %s3400_s6 = scalar_lea.vmem %s81_s14, 256  ;;  %p3405_p8 = scmp.lt.s32.totalorder %s81_s14, %s81_s14 }
  0x4f   :  { %p3401_p7 = scmp.ne.s32.totalorder %s81_s14, %s3400_s6  ;;  %p3406_p9 = scmp.lt.s32.totalorder %s3400_s6, %s3400_s6 }
  0x51   :  { %p3407_p10 = por %p3406_p9, %p3405_p8 }
  0x53   :  { %p3408_p11 = pnand %p3407_p10, %p3401_p7 }
  0x55   :  { %3411 = shalt.err (!%p3408_p11)
}
  0x56   :  { %86 = dma.hbm_to_vmem [thread:$0]  %s4046_s9, 256, %s81_s14, [#allocation9], %s3468_s29, %s3468_s29, %s3469_s30  }
  0x57   :  { %s3412_s25 = scalar_lea.hbm %s4047_s10, 16 }
  0x58   :  { %p3413_p12 = scmp.ne.s32.totalorder %s4047_s10, %s3412_s25  ;;  %p3416_p13 = scmp.lt.u32.totalorder %s3412_s25, %s4047_s10 }
  0x5a   :  { %p3418_p0 = pnand %p3416_p13, %p3413_p12 }
  0x5c   :  { %3421 = shalt.err (!%p3418_p0)
}
  0x5d   :  { %s3422_s13 = scalar_lea.vmem %s94_s16, 16  ;;  %s3426_s15 = scalar_lea.vmem %s94_s16, 32 }
  0x5e   :  { %p3423_p1 = scmp.ne.s32.totalorder %s94_s16, %s3422_s13  ;;  %p3427_p2 = scmp.lt.s32.totalorder %s94_s16, %s94_s16 }
  0x5f   :  { %p3428_p3 = scmp.lt.s32.totalorder %s3426_s15, %s3422_s13 }
  0x61   :  { %p3429_p4 = por %p3428_p3, %p3427_p2 }
  0x63   :  { %p3430_p5 = pnand %p3429_p4, %p3423_p1 }
  0x65   :  { %3433 = shalt.err (!%p3430_p5)
}
  0x66   :  { %96 = dma.hbm_to_vmem [thread:$0]  %s4047_s10, 16, %s94_s16, [#allocation12]  }
  0x67   :  { %3456 = dma.done.wait [#allocation3], 256  }
  0x68   :  { %3457 = vsyncadd [#allocation3], 4294967040 }
  0x69   :  { %3458 = dma.done.wait [#allocation6], 384  }
  0x6a   :  { %3459 = vsyncadd [#allocation6], 4294966912 }
  0x6b   :  { %3460 = dma.done.wait [#allocation9], 272  }
  0x6c   :  { %3461 = vsyncadd [#allocation9], 4294967024 }
  0x6d   :  { %3462 = dma.done.wait [#allocation12], 16  }
  0x6e   :  { %3463 = vsyncadd [#allocation12], 4294967280  ;;  %v3474_v0 = vmov 0.0|0.0   ;;  %vm3475_vm0 = vmmov 0   ;;  %v3476_v1 = vmov 0.0   ;;  %vm126_vm1 = vcmask 130048  }
  0x6f   :  { %3008 = vmatprep.subr.bf16.mxu1 %v3474_v0  ;;  %2841 = vmatprep.mubr.msk.f32.mxu1 %vm3475_vm0, %v3476_v1  ;;  %v117_v2 = vld [vmem:[#allocation5] sm:$0xff]  ;;  %v118_v3 = vld [vmem:[#allocation5 + $0x8] sm:$0xff]  ;;  %v208_v4 = vld [vmem:[%s4039_s2] sm:$0xff]  ;;  %s3477_s6 = smov 64   ;;  %vm343_vm2 = vcmask 1041409   ;;  %vm212_vm3 = vcmask 261120  }
  0x70   :  { %v3004_v5 = vpack.c.bf16 %v118_v3, %v117_v2  ;;  %v209_v6 = vld [vmem:[%s4039_s2 + $0x8] sm:$0xff]  ;;  %v115_v7 = vld [vmem:[#allocation2] sm:$0xff]  ;;  %v210_v9 = vld [vmem:[%s4039_s2 + $0x10] sm:$0xff]  ;;  %vm1416_vm4 = vcmask 64512   ;;  %s3481_s7 = smov 80   ;;  %vm1710_vm5 = vcmask 122880  }
  0x71   :  { %v3642_v8 = vpack.c.bf16 %v209_v6, %v208_v4  ;;  %2830 = vmatprep.mubr.msk.f32.mxu0 %vm126_vm1, %v115_v7  ;;  %v211_v10 = vld [vmem:[%s4039_s2 + $0x18] sm:$0xff]  ;;  %v116_v11 = vld [vmem:[#allocation2 + $0x8] sm:$0xff]  ;;  %v2699_v15 = vld [vmem:[%s4040_s3] ss:$0 sm:$0xff]  ;;  %s3478_s3 = smov 32   ;;  %s3483_s20 = smov [#allocation13]  }
  0x72   :  { %3005 = vmatprep.subr.bf16.mxu0 %v3004_v5  ;;  %v3652_v12 = vpack.c.bf16 %v211_v10, %v210_v9  ;;  %s2684_s21 = sshll.u32 %s3483_s20, 4  ;;  %s2685_s21 = int_to_ptr.vmem [resolvable:$true] %s2684_s21 }
  0x73   :  { %3010 = vmatpush3.bf16.msra.mxu1 %v3642_v8  ;;  %3007 = vmatpush3.bf16.msra.mxu0 %v3004_v5  ;;  %s3434_s22 = scalar_lea.vmem %s2685_s21, 256  ;;  %p3439_p7 = scmp.lt.s32.totalorder %s2685_s21, %s2685_s21 }
  0x74   :  { %3011 = vmatprep.subr.bf16.mxu1 %v3474_v0  ;;  %3014 = vmatprep.subr.bf16.mxu0 %v3474_v0  ;;  %p3435_p6 = scmp.ne.s32.totalorder %s2685_s21, %s3434_s22  ;;  %p3440_p8 = scmp.lt.s32.totalorder %s3434_s22, %s3434_s22 }
  0x76   :  { %2831 = vmatmul.mubr.msk.f32.vlgmr.msra.gmra.mrb[0].mxu0 %vm126_vm1, %v116_v11  ;;  %p3441_p9 = por %p3440_p8, %p3439_p7 }
  0x77   :  { %3013 = vmatpush3.bf16.msra.mxu1 %v3652_v12  ;;  %3016 = vmatpush3.bf16.msra.mxu0 %v3642_v8 }
  0x78   :  { %3017 = vmatprep.subr.bf16.mxu0 %v3474_v0  ;;  %2852 = vmatprep.mubr.msk.f32.mxu0 %vm3475_vm0, %v3476_v1  ;;  %p3442_p10 = pnand %p3441_p9, %p3435_p6 }
  0x79   :  { %3020 = vmatprep.subr.bf16.mxu1 %v3474_v0 }
  0x7a   :  { %2842 = vmatmul.mubr.f32.vlgmr.msra.gmra.mrb[0].mxu1 %v3476_v1 }
  0x7b   :  { %3019 = vmatpush3.bf16.msra.mxu0 %v3652_v12  ;;  %3022 = vmatpush3.bf16.msra.mxu1 %v3642_v8 }
  0x7c   :  { %3023 = vmatprep.subr.bf16.mxu1 %v3474_v0  ;;  %2863 = vmatprep.mubr.msk.f32.mxu1 %vm3475_vm0, %v3476_v1 }
  0x7d   :  { %3026 = vmatprep.subr.bf16.mxu0 %v3474_v0 }
  0x7f   :  { %3025 = vmatpush3.bf16.msra.mxu1 %v3652_v12 }
  0x80   :  { %3032 = vmatprep.subr.bf16.mxu1 %v3474_v0 }
 0x149   :  { %v2832_v13 = vpop.f32.mrb[0].mxu0 }
 0x14a   :  { %v199_v14 = vpop.f32.mrb[1].mxu0  ;;  %v3675_v16 = vadd.f32 %v2832_v13, %v2699_v15 }
 0x14b   :  { %v3677_v20 = vadd.f32 %v2699_v15, %v199_v14 }
 0x14d   :  { %v282_v17 = vpop.f32.mrb[0].mxu1 }
 0x14e   :  { %v287_v18 = vrot.slane %v282_v17, 1  ;;  %v2843_v19 = vpop.f32.mrb[1].mxu1  ;;  %v290_v22 = vadd.f32 %v282_v17, %v3677_v20 }
 0x150   :  { %v291_v21 = vadd.f32 %v287_v18, %v3675_v16  ;;  %v2702_v26 = vmul.f32 -1.442695, %v290_v22 }
 0x152   :  { %3110 = vtanh.f32 %v291_v21  ;;  %v2703_v25 = vmul.f32 -1.442695, %v291_v21 }
 0x153   :  { %3112 = vtanh.f32 %v290_v22 }
 0x154   :  { %3114 = vpow2.f32 %v2703_v25 }
 0x155   :  { %3116 = vpow2.f32 %v2702_v26 }
 0x15c   :  { %v3111_v23 = vpop.eup %3110 }
 0x15d   :  { %312 = vrot.lane.b32.xlu0 %v3111_v23, %s3477_s6  ;;  %v3113_v24 = vpop.eup %3112 }
 0x15e   :  { %v3115_v27 = vpop.eup %3114 }
 0x15f   :  { %v299_v28 = vadd.f32 1.0, %v3115_v27  ;;  %v3117_v29 = vpop.eup %3116 }
 0x160   :  { %v298_v30 = vadd.f32 1.0, %v3117_v29 }
 0x161   :  { %310 = vrot.lane.b32.xlu0 %v3113_v24, %s3477_s6  ;;  %3118 = vrcp.f32 %v299_v28 }
 0x162   :  { %3120 = vrcp.f32 %v298_v30 }
 0x16b   :  { %v3119_v31 = vpop.eup %3118 }
 0x16c   :  { %v3121_v34 = vpop.eup %3120  ;;  %v307_v37 = vmul.f32 0.0, %v3119_v31 }
 0x16d   :  { %v306_v40 = vmul.f32 0.0, %v3121_v34 }
 0x1cf   :  { %v313_v32 = vpop.permute.xlu0 %312 }
 0x1d0   :  { %v317_v33 = vmul.f32 %v3119_v31, %v313_v32 }
 0x1d2   :  { %322 = vrot.lane.b32.xlu1 %v317_v33, %s3478_s3 }
 0x1d3   :  { %v311_v35 = vpop.permute.xlu0 %310 }
 0x1d4   :  { %v316_v36 = vmul.f32 %v3121_v34, %v311_v35 }
 0x1d6   :  { %320 = vrot.lane.b32.xlu1 %v316_v36, %s3478_s3 }
 0x244   :  { %v323_v38 = vpop.permute.xlu1 %322 }
 0x245   :  { %v327_v39 = vadd.f32 %v323_v38, %v307_v37 }
 0x247   :  { %3122 = vtanh.f32 %v327_v39  ;;  %v442_v10 = vrot.slane %v327_v39, 7 }
 0x248   :  { %v321_v41 = vpop.permute.xlu1 %320 }
 0x249   :  { %v326_v42 = vadd.f32 %v321_v41, %v306_v40 }
 0x24b   :  { %3124 = vtanh.f32 %v326_v42  ;;  %v441_v13 = vrot.slane %v326_v42, 7 }
 0x251   :  { %v3123_v43 = vpop.eup %3122 }
 0x252   :  { %334 = vrot.lane.b32.xlu0 %v3123_v43, %s3477_s6 }
 0x255   :  { %v3125_v44 = vpop.eup %3124 }
 0x256   :  { %332 = vrot.lane.b32.xlu1 %v3125_v44, %s3477_s6 }
 0x2c4   :  { %v335_v45 = vpop.permute.xlu0 %334 }
 0x2c5   :  { %v339_v46 = vmul.f32 %v3119_v31, %v335_v45 }
 0x2c7   :  { %v342_v48 = vrot.slane %v339_v46, 7 }
 0x2c8   :  { %v333_v47 = vpop.permute.xlu1 %332 }
 0x2c9   :  { %v338_v49 = vmul.f32 %v3121_v34, %v333_v47 }
 0x2cb   :  { %v344_v50 = vsel %vm343_vm2, %v342_v48, %v338_v49 }
 0x2cc   :  { %345 = vrot.lane.b32.xlu0 %v344_v50, %s3478_s3 }
 0x33e   :  { %v346_v51 = vpop.permute.xlu0 %345 }
 0x33f   :  { %2853 = vmatmul.mubr.msk.f32.vlgmr.msra.gmra.mrb[2].mxu0 %vm212_vm3, %v346_v51 }
 0x340   :  { %3028 = vmatpush3.bf16.msra.mxu0 %v3642_v8  ;;  %2874 = vmatprep.mubr.msk.f32.mxu0 %vm3475_vm0, %v3476_v1 }
 0x341   :  { %3029 = vmatprep.subr.bf16.mxu0 %v3474_v0 }
 0x344   :  { %3031 = vmatpush3.bf16.msra.mxu0 %v3652_v12 }
 0x345   :  { %3038 = vmatprep.subr.bf16.mxu0 %v3474_v0 }
 0x412   :  { %v415_v52 = vpop.f32.mrb[2].mxu0 }
 0x413   :  { %v420_v53 = vrot.slane %v415_v52, 7  ;;  %v424_v54 = vadd.f32 %v415_v52, %v3675_v16  ;;  %v2854_v55 = vpop.f32.mrb[3].mxu0 }
 0x415   :  { %v423_v56 = vadd.f32 %v420_v53, %v3677_v20  ;;  %3126 = vtanh.f32 %v424_v54  ;;  %v2706_v59 = vmul.f32 -1.442695, %v424_v54 }
 0x417   :  { %3128 = vtanh.f32 %v423_v56  ;;  %v2705_v60 = vmul.f32 -1.442695, %v423_v56 }
 0x418   :  { %3130 = vpow2.f32 %v2706_v59 }
 0x419   :  { %3132 = vpow2.f32 %v2705_v60 }
 0x41f   :  { %v3127_v57 = vpop.eup %3126 }
 0x420   :  { %451 = vrot.lane.b32.xlu0 %v3127_v57, %s3477_s6 }
 0x421   :  { %v3129_v58 = vpop.eup %3128 }
 0x422   :  { %449 = vrot.lane.b32.xlu1 %v3129_v58, %s3477_s6  ;;  %v3131_v61 = vpop.eup %3130 }
 0x423   :  { %v3133_v62 = vpop.eup %3132  ;;  %v432_v63 = vadd.f32 1.0, %v3131_v61 }
 0x424   :  { %v431_v2 = vadd.f32 1.0, %v3133_v62 }
 0x425   :  { %3134 = vrcp.f32 %v432_v63 }
 0x426   :  { %3136 = vrcp.f32 %v431_v2 }
 0x42f   :  { %v3135_v3 = vpop.eup %3134 }
 0x430   :  { %v3137_v6 = vpop.eup %3136  ;;  %v446_v11 = vmul.f32 %v3135_v3, %v442_v10 }
 0x431   :  { %v445_v17 = vmul.f32 %v3137_v6, %v441_v13 }
 0x492   :  { %v452_v4 = vpop.permute.xlu0 %451 }
 0x493   :  { %v456_v5 = vmul.f32 %v3135_v3, %v452_v4 }
 0x494   :  { %v450_v7 = vpop.permute.xlu1 %449 }
 0x495   :  { %461 = vrot.lane.b32.xlu0 %v456_v5, %s3478_s3  ;;  %v455_v9 = vmul.f32 %v3137_v6, %v450_v7 }
 0x497   :  { %459 = vrot.lane.b32.xlu1 %v455_v9, %s3478_s3 }
 0x507   :  { %v462_v14 = vpop.permute.xlu0 %461 }
 0x508   :  { %v466_v15 = vadd.f32 %v462_v14, %v446_v11 }
 0x509   :  { %v460_v18 = vpop.permute.xlu1 %459 }
 0x50a   :  { %3138 = vtanh.f32 %v466_v15  ;;  %v465_v19 = vadd.f32 %v460_v18, %v445_v17  ;;  %v581_v51 = vrot.slane %v466_v15, 7 }
 0x50c   :  { %3140 = vtanh.f32 %v465_v19  ;;  %v580_v50 = vrot.slane %v465_v19, 7 }
 0x514   :  { %v3139_v21 = vpop.eup %3138 }
 0x515   :  { %473 = vrot.lane.b32.xlu0 %v3139_v21, %s3477_s6 }
 0x516   :  { %v3141_v22 = vpop.eup %3140 }
 0x517   :  { %471 = vrot.lane.b32.xlu1 %v3141_v22, %s3477_s6 }
 0x587   :  { %v474_v23 = vpop.permute.xlu0 %473 }
 0x588   :  { %v478_v26 = vmul.f32 %v3135_v3, %v474_v23 }
 0x589   :  { %v472_v24 = vpop.permute.xlu1 %471 }
 0x58a   :  { %v477_v25 = vmul.f32 %v3137_v6, %v472_v24 }
 0x58c   :  { %v481_v27 = vrot.slane %v477_v25, 1 }
 0x58e   :  { %v482_v28 = vsel %vm343_vm2, %v478_v26, %v481_v27 }
 0x58f   :  { %483 = vrot.lane.b32.xlu1 %v482_v28, %s3478_s3 }
 0x601   :  { %v484_v29 = vpop.permute.xlu1 %483 }
 0x602   :  { %2864 = vmatmul.mubr.msk.f32.vlgmr.msra.gmra.mrb[2].mxu1 %vm212_vm3, %v484_v29 }
 0x603   :  { %3034 = vmatpush3.bf16.msra.mxu1 %v3642_v8  ;;  %2885 = vmatprep.mubr.msk.f32.mxu1 %vm3475_vm0, %v3476_v1 }
 0x604   :  { %3035 = vmatprep.subr.bf16.mxu1 %v3474_v0 }
 0x607   :  { %3037 = vmatpush3.bf16.msra.mxu1 %v3652_v12 }
 0x608   :  { %3044 = vmatprep.subr.bf16.mxu1 %v3474_v0 }
 0x6d5   :  { %v553_v30 = vpop.f32.mrb[2].mxu1 }
 0x6d6   :  { %v558_v31 = vrot.slane %v553_v30, 6  ;;  %v559_v32 = vrot.slane %v553_v30, 7  ;;  %v2865_v33 = vpop.f32.mrb[3].mxu1 }
 0x6d8   :  { %v562_v34 = vadd.f32 %v558_v31, %v3677_v20  ;;  %v563_v35 = vadd.f32 %v559_v32, %v3675_v16 }
 0x6da   :  { %3142 = vtanh.f32 %v562_v34  ;;  %v2708_v38 = vmul.f32 -1.442695, %v562_v34  ;;  %v2709_v39 = vmul.f32 -1.442695, %v563_v35 }
 0x6db   :  { %3144 = vtanh.f32 %v563_v35 }
 0x6dc   :  { %3146 = vpow2.f32 %v2708_v38 }
 0x6dd   :  { %3148 = vpow2.f32 %v2709_v39 }
 0x6e4   :  { %v3143_v36 = vpop.eup %3142 }
 0x6e5   :  { %v3145_v37 = vpop.eup %3144  ;;  %588 = vrot.lane.b32.xlu0 %v3143_v36, %s3477_s6 }
 0x6e6   :  { %590 = vrot.lane.b32.xlu1 %v3145_v37, %s3477_s6  ;;  %v3147_v40 = vpop.eup %3146 }
 0x6e7   :  { %v3149_v41 = vpop.eup %3148  ;;  %v570_v42 = vadd.f32 1.0, %v3147_v40 }
 0x6e8   :  { %v571_v43 = vadd.f32 1.0, %v3149_v41 }
 0x6e9   :  { %3150 = vrcp.f32 %v570_v42 }
 0x6ea   :  { %3152 = vrcp.f32 %v571_v43 }
 0x6f3   :  { %v3151_v44 = vpop.eup %3150 }
 0x6f4   :  { %v3153_v46 = vpop.eup %3152  ;;  %v584_v52 = vmul.f32 %v3151_v44, %v580_v50 }
 0x6f5   :  { %v585_v53 = vmul.f32 %v3153_v46, %v581_v51 }
 0x757   :  { %v589_v45 = vpop.permute.xlu0 %588 }
 0x758   :  { %v591_v47 = vpop.permute.xlu1 %590  ;;  %v594_v48 = vmul.f32 %v3151_v44, %v589_v45 }
 0x759   :  { %v595_v49 = vmul.f32 %v3153_v46, %v591_v47 }
 0x75a   :  { %598 = vrot.lane.b32.xlu0 %v594_v48, %s3478_s3 }
 0x75b   :  { %600 = vrot.lane.b32.xlu1 %v595_v49, %s3478_s3 }
 0x7cc   :  { %v599_v54 = vpop.permute.xlu0 %598 }
 0x7cd   :  { %v601_v55 = vpop.permute.xlu1 %600  ;;  %v604_v56 = vadd.f32 %v599_v54, %v584_v52 }
 0x7ce   :  { %v605_v57 = vadd.f32 %v601_v55, %v585_v53 }
 0x7cf   :  { %3154 = vtanh.f32 %v604_v56  ;;  %v720_v30 = vrot.slane %v604_v56, 7 }
 0x7d0   :  { %3156 = vtanh.f32 %v605_v57  ;;  %v721_v31 = vrot.slane %v605_v57, 7 }
 0x7d9   :  { %v3155_v58 = vpop.eup %3154 }
 0x7da   :  { %v3157_v59 = vpop.eup %3156  ;;  %610 = vrot.lane.b32.xlu0 %v3155_v58, %s3477_s6 }
 0x7db   :  { %612 = vrot.lane.b32.xlu1 %v3157_v59, %s3477_s6 }
 0x84c   :  { %v611_v60 = vpop.permute.xlu0 %610 }
 0x84d   :  { %v613_v61 = vpop.permute.xlu1 %612  ;;  %v616_v62 = vmul.f32 %v3151_v44, %v611_v60 }
 0x84e   :  { %v617_v63 = vmul.f32 %v3153_v46, %v613_v61 }
 0x84f   :  { %v620_v2 = vrot.slane %v616_v62, 2 }
 0x850   :  { %v621_v3 = vrot.slane %v617_v63, 1 }
 0x852   :  { %v622_v4 = vsel %vm343_vm2, %v621_v3, %v620_v2 }
 0x853   :  { %623 = vrot.lane.b32.xlu0 %v622_v4, %s3478_s3 }
 0x8c5   :  { %v624_v5 = vpop.permute.xlu0 %623 }
 0x8c6   :  { %2875 = vmatmul.mubr.msk.f32.vlgmr.msra.gmra.mrb[4].mxu0 %vm212_vm3, %v624_v5 }
 0x8c7   :  { %3040 = vmatpush3.bf16.msra.mxu0 %v3642_v8  ;;  %2896 = vmatprep.mubr.msk.f32.mxu0 %vm3475_vm0, %v3476_v1 }
 0x8c8   :  { %3041 = vmatprep.subr.bf16.mxu0 %v3474_v0 }
 0x8cb   :  { %3043 = vmatpush3.bf16.msra.mxu0 %v3652_v12 }
 0x8cc   :  { %3050 = vmatprep.subr.bf16.mxu0 %v3474_v0 }
 0x999   :  { %v693_v6 = vpop.f32.mrb[4].mxu0 }
 0x99a   :  { %v698_v7 = vrot.slane %v693_v6, 5  ;;  %v699_v9 = vrot.slane %v693_v6, 6  ;;  %v2876_v10 = vpop.f32.mrb[5].mxu0 }
 0x99c   :  { %v702_v11 = vadd.f32 %v698_v7, %v3677_v20  ;;  %v703_v13 = vadd.f32 %v699_v9, %v3675_v16 }
 0x99e   :  { %3158 = vtanh.f32 %v702_v11  ;;  %v2711_v17 = vmul.f32 -1.442695, %v702_v11  ;;  %v2712_v18 = vmul.f32 -1.442695, %v703_v13 }
 0x99f   :  { %3160 = vtanh.f32 %v703_v13 }
 0x9a0   :  { %3162 = vpow2.f32 %v2711_v17 }
 0x9a1   :  { %3164 = vpow2.f32 %v2712_v18 }
 0x9a8   :  { %v3159_v14 = vpop.eup %3158 }
 0x9a9   :  { %v3161_v15 = vpop.eup %3160  ;;  %728 = vrot.lane.b32.xlu1 %v3159_v14, %s3477_s6 }
 0x9aa   :  { %730 = vrot.lane.b32.xlu0 %v3161_v15, %s3477_s6  ;;  %v3163_v19 = vpop.eup %3162 }
 0x9ab   :  { %v3165_v21 = vpop.eup %3164  ;;  %v710_v22 = vadd.f32 1.0, %v3163_v19 }
 0x9ac   :  { %v711_v23 = vadd.f32 1.0, %v3165_v21 }
 0x9ad   :  { %3166 = vrcp.f32 %v710_v22 }
 0x9ae   :  { %3168 = vrcp.f32 %v711_v23 }
 0x9b7   :  { %v3167_v24 = vpop.eup %3166 }
 0x9b8   :  { %v3169_v26 = vpop.eup %3168  ;;  %v724_v32 = vmul.f32 %v3167_v24, %v720_v30 }
 0x9b9   :  { %v725_v33 = vmul.f32 %v3169_v26, %v721_v31 }
 0xa1b   :  { %v729_v25 = vpop.permute.xlu1 %728 }
 0xa1c   :  { %v731_v27 = vpop.permute.xlu0 %730  ;;  %v734_v28 = vmul.f32 %v3167_v24, %v729_v25 }
 0xa1d   :  { %v735_v29 = vmul.f32 %v3169_v26, %v731_v27 }
 0xa1e   :  { %738 = vrot.lane.b32.xlu1 %v734_v28, %s3478_s3 }
 0xa1f   :  { %740 = vrot.lane.b32.xlu0 %v735_v29, %s3478_s3 }
 0xa90   :  { %v739_v34 = vpop.permute.xlu1 %738 }
 0xa91   :  { %v741_v35 = vpop.permute.xlu0 %740  ;;  %v744_v36 = vadd.f32 %v739_v34, %v724_v32 }
 0xa92   :  { %v745_v37 = vadd.f32 %v741_v35, %v725_v33 }
 0xa93   :  { %3170 = vtanh.f32 %v744_v36  ;;  %v860_v6 = vrot.slane %v744_v36, 7 }
 0xa94   :  { %3172 = vtanh.f32 %v745_v37  ;;  %v861_v7 = vrot.slane %v745_v37, 7 }
 0xa9d   :  { %v3171_v38 = vpop.eup %3170 }
 0xa9e   :  { %v3173_v39 = vpop.eup %3172  ;;  %750 = vrot.lane.b32.xlu1 %v3171_v38, %s3477_s6 }
 0xa9f   :  { %752 = vrot.lane.b32.xlu0 %v3173_v39, %s3477_s6 }
 0xb10   :  { %v751_v40 = vpop.permute.xlu1 %750 }
 0xb11   :  { %v753_v41 = vpop.permute.xlu0 %752  ;;  %v756_v42 = vmul.f32 %v3167_v24, %v751_v40 }
 0xb12   :  { %v757_v43 = vmul.f32 %v3169_v26, %v753_v41 }
 0xb13   :  { %v760_v44 = vrot.slane %v756_v42, 3 }
 0xb14   :  { %v761_v45 = vrot.slane %v757_v43, 2 }
 0xb16   :  { %v762_v46 = vsel %vm343_vm2, %v761_v45, %v760_v44 }
 0xb17   :  { %763 = vrot.lane.b32.xlu1 %v762_v46, %s3478_s3 }
 0xb89   :  { %v764_v47 = vpop.permute.xlu1 %763 }
 0xb8a   :  { %2886 = vmatmul.mubr.msk.f32.vlgmr.msra.gmra.mrb[4].mxu1 %vm212_vm3, %v764_v47 }
 0xb8b   :  { %3046 = vmatpush3.bf16.msra.mxu1 %v3642_v8  ;;  %2907 = vmatprep.mubr.msk.f32.mxu1 %vm3475_vm0, %v3476_v1 }
 0xb8c   :  { %3047 = vmatprep.subr.bf16.mxu1 %v3474_v0 }
 0xb8f   :  { %3049 = vmatpush3.bf16.msra.mxu1 %v3652_v12 }
 0xb90   :  { %3056 = vmatprep.subr.bf16.mxu1 %v3474_v0 }
 0xc5d   :  { %v833_v48 = vpop.f32.mrb[4].mxu1 }
 0xc5e   :  { %v838_v49 = vrot.slane %v833_v48, 4  ;;  %v839_v50 = vrot.slane %v833_v48, 5  ;;  %v2887_v51 = vpop.f32.mrb[5].mxu1 }
 0xc60   :  { %v842_v52 = vadd.f32 %v838_v49, %v3677_v20  ;;  %v843_v53 = vadd.f32 %v839_v50, %v3675_v16 }
 0xc62   :  { %3174 = vtanh.f32 %v842_v52  ;;  %v2714_v56 = vmul.f32 -1.442695, %v842_v52  ;;  %v2715_v57 = vmul.f32 -1.442695, %v843_v53 }
 0xc63   :  { %3176 = vtanh.f32 %v843_v53 }
 0xc64   :  { %3178 = vpow2.f32 %v2714_v56 }
 0xc65   :  { %3180 = vpow2.f32 %v2715_v57 }
 0xc6c   :  { %v3175_v54 = vpop.eup %3174 }
 0xc6d   :  { %v3177_v55 = vpop.eup %3176  ;;  %868 = vrot.lane.b32.xlu0 %v3175_v54, %s3477_s6 }
 0xc6e   :  { %870 = vrot.lane.b32.xlu1 %v3177_v55, %s3477_s6  ;;  %v3179_v58 = vpop.eup %3178 }
 0xc6f   :  { %v3181_v59 = vpop.eup %3180  ;;  %v850_v60 = vadd.f32 1.0, %v3179_v58 }
 0xc70   :  { %v851_v61 = vadd.f32 1.0, %v3181_v59 }
 0xc71   :  { %3182 = vrcp.f32 %v850_v60 }
 0xc72   :  { %3184 = vrcp.f32 %v851_v61 }
 0xc7b   :  { %v3183_v62 = vpop.eup %3182 }
 0xc7c   :  { %v3185_v2 = vpop.eup %3184  ;;  %v864_v9 = vmul.f32 %v3183_v62, %v860_v6 }
 0xc7d   :  { %v865_v10 = vmul.f32 %v3185_v2, %v861_v7 }
 0xcdf   :  { %v869_v63 = vpop.permute.xlu0 %868 }
 0xce0   :  { %v871_v3 = vpop.permute.xlu1 %870  ;;  %v874_v4 = vmul.f32 %v3183_v62, %v869_v63 }
 0xce1   :  { %v875_v5 = vmul.f32 %v3185_v2, %v871_v3 }
 0xce2   :  { %878 = vrot.lane.b32.xlu0 %v874_v4, %s3478_s3 }
 0xce3   :  { %880 = vrot.lane.b32.xlu1 %v875_v5, %s3478_s3 }
 0xd54   :  { %v879_v11 = vpop.permute.xlu0 %878 }
 0xd55   :  { %v881_v13 = vpop.permute.xlu1 %880  ;;  %v884_v14 = vadd.f32 %v879_v11, %v864_v9 }
 0xd56   :  { %v885_v15 = vadd.f32 %v881_v13, %v865_v10 }
 0xd57   :  { %3186 = vtanh.f32 %v884_v14  ;;  %v1000_v46 = vrot.slane %v884_v14, 7 }
 0xd58   :  { %3188 = vtanh.f32 %v885_v15  ;;  %v1001_v47 = vrot.slane %v885_v15, 7 }
 0xd61   :  { %v3187_v17 = vpop.eup %3186 }
 0xd62   :  { %v3189_v18 = vpop.eup %3188  ;;  %890 = vrot.lane.b32.xlu0 %v3187_v17, %s3477_s6 }
 0xd63   :  { %892 = vrot.lane.b32.xlu1 %v3189_v18, %s3477_s6 }
 0xdd4   :  { %v891_v19 = vpop.permute.xlu0 %890 }
 0xdd5   :  { %v893_v21 = vpop.permute.xlu1 %892  ;;  %v896_v22 = vmul.f32 %v3183_v62, %v891_v19 }
 0xdd6   :  { %v897_v23 = vmul.f32 %v3185_v2, %v893_v21 }
 0xdd7   :  { %v900_v24 = vrot.slane %v896_v22, 4 }
 0xdd8   :  { %v901_v25 = vrot.slane %v897_v23, 3 }
 0xdda   :  { %v902_v26 = vsel %vm343_vm2, %v901_v25, %v900_v24 }
 0xddb   :  { %903 = vrot.lane.b32.xlu0 %v902_v26, %s3478_s3 }
 0xe4d   :  { %v904_v27 = vpop.permute.xlu0 %903 }
 0xe4e   :  { %2897 = vmatmul.mubr.msk.f32.vlgmr.msra.gmra.mrb[6].mxu0 %vm212_vm3, %v904_v27 }
 0xe4f   :  { %3052 = vmatpush3.bf16.msra.mxu0 %v3642_v8  ;;  %2918 = vmatprep.mubr.msk.f32.mxu0 %vm3475_vm0, %v3476_v1 }
 0xe50   :  { %3053 = vmatprep.subr.bf16.mxu0 %v3474_v0 }
 0xe53   :  { %3055 = vmatpush3.bf16.msra.mxu0 %v3652_v12 }
 0xe54   :  { %2932 = vmatprep.subr.mxu0 %v3476_v1 }
 0xf21   :  { %v973_v28 = vpop.f32.mrb[6].mxu0 }
 0xf22   :  { %v978_v29 = vrot.slane %v973_v28, 3  ;;  %v979_v30 = vrot.slane %v973_v28, 4  ;;  %v2898_v31 = vpop.f32.mrb[7].mxu0 }
 0xf24   :  { %v982_v32 = vadd.f32 %v978_v29, %v3677_v20  ;;  %v983_v33 = vadd.f32 %v979_v30, %v3675_v16 }
 0xf26   :  { %3190 = vtanh.f32 %v982_v32  ;;  %v2717_v35 = vmul.f32 -1.442695, %v982_v32  ;;  %v2718_v12 = vmul.f32 -1.442695, %v983_v33 }
 0xf27   :  { %3192 = vtanh.f32 %v983_v33 }
 0xf28   :  { %3194 = vpow2.f32 %v2717_v35 }
 0xf29   :  { %3196 = vpow2.f32 %v2718_v12 }
 0xf30   :  { %v3191_v8 = vpop.eup %3190 }
 0xf31   :  { %v3193_v34 = vpop.eup %3192  ;;  %1008 = vrot.lane.b32.xlu1 %v3191_v8, %s3477_s6 }
 0xf32   :  { %1010 = vrot.lane.b32.xlu0 %v3193_v34, %s3477_s6  ;;  %v3195_v36 = vpop.eup %3194 }
 0xf33   :  { %v3197_v37 = vpop.eup %3196  ;;  %v990_v38 = vadd.f32 1.0, %v3195_v36 }
 0xf34   :  { %v991_v39 = vadd.f32 1.0, %v3197_v37 }
 0xf35   :  { %3198 = vrcp.f32 %v990_v38 }
 0xf36   :  { %3200 = vrcp.f32 %v991_v39 }
 0xf3f   :  { %v3199_v40 = vpop.eup %3198 }
 0xf40   :  { %v3201_v42 = vpop.eup %3200  ;;  %v1004_v48 = vmul.f32 %v3199_v40, %v1000_v46 }
 0xf41   :  { %v1005_v49 = vmul.f32 %v3201_v42, %v1001_v47 }
 0xfa3   :  { %v1009_v41 = vpop.permute.xlu1 %1008 }
 0xfa4   :  { %v1011_v43 = vpop.permute.xlu0 %1010  ;;  %v1014_v44 = vmul.f32 %v3199_v40, %v1009_v41 }
 0xfa5   :  { %v1015_v45 = vmul.f32 %v3201_v42, %v1011_v43 }
 0xfa6   :  { %1018 = vrot.lane.b32.xlu1 %v1014_v44, %s3478_s3 }
 0xfa7   :  { %1020 = vrot.lane.b32.xlu0 %v1015_v45, %s3478_s3 }
0x1018   :  { %v1019_v50 = vpop.permute.xlu1 %1018 }
0x1019   :  { %v1021_v51 = vpop.permute.xlu0 %1020  ;;  %v1024_v52 = vadd.f32 %v1019_v50, %v1004_v48 }
0x101a   :  { %v1025_v53 = vadd.f32 %v1021_v51, %v1005_v49 }
0x101b   :  { %3202 = vtanh.f32 %v1024_v52  ;;  %v1140_v26 = vrot.slane %v1024_v52, 7 }
0x101c   :  { %3204 = vtanh.f32 %v1025_v53  ;;  %v1141_v27 = vrot.slane %v1025_v53, 7 }
0x1025   :  { %v3203_v54 = vpop.eup %3202 }
0x1026   :  { %v3205_v55 = vpop.eup %3204  ;;  %1030 = vrot.lane.b32.xlu1 %v3203_v54, %s3477_s6 }
0x1027   :  { %1032 = vrot.lane.b32.xlu0 %v3205_v55, %s3477_s6 }
0x1098   :  { %v1031_v56 = vpop.permute.xlu1 %1030 }
0x1099   :  { %v1033_v57 = vpop.permute.xlu0 %1032  ;;  %v1036_v58 = vmul.f32 %v3199_v40, %v1031_v56 }
0x109a   :  { %v1037_v59 = vmul.f32 %v3201_v42, %v1033_v57 }
0x109b   :  { %v1040_v60 = vrot.slane %v1036_v58, 5 }
0x109c   :  { %v1041_v61 = vrot.slane %v1037_v59, 4 }
0x109e   :  { %v1042_v62 = vsel %vm343_vm2, %v1041_v61, %v1040_v60 }
0x109f   :  { %1043 = vrot.lane.b32.xlu1 %v1042_v62, %s3478_s3 }
0x1111   :  { %v1044_v63 = vpop.permute.xlu1 %1043 }
0x1112   :  { %2908 = vmatmul.mubr.msk.f32.vlgmr.msra.gmra.mrb[6].mxu1 %vm212_vm3, %v1044_v63 }
0x1113   :  { %2929 = vmatprep.mubr.msk.f32.mxu1 %vm3475_vm0, %v3476_v1 }
0x11e5   :  { %v1113_v2 = vpop.f32.mrb[6].mxu1 }
0x11e6   :  { %v1118_v3 = vrot.slane %v1113_v2, 2  ;;  %v1119_v4 = vrot.slane %v1113_v2, 3  ;;  %v2909_v5 = vpop.f32.mrb[7].mxu1 }
0x11e8   :  { %v1122_v6 = vadd.f32 %v1118_v3, %v3677_v20  ;;  %v1123_v7 = vadd.f32 %v1119_v4, %v3675_v16 }
0x11ea   :  { %3206 = vtanh.f32 %v1122_v6  ;;  %v2720_v11 = vmul.f32 -1.442695, %v1122_v6  ;;  %v2721_v13 = vmul.f32 -1.442695, %v1123_v7  ;;  %v1318_v6 = vld [vmem:[%s4041_s4] sm:$0xff] }
0x11eb   :  { %3208 = vtanh.f32 %v1123_v7  ;;  %v1319_v7 = vld [vmem:[%s4041_s4 + $0x8] sm:$0xff] }
0x11ec   :  { %3210 = vpow2.f32 %v2720_v11  ;;  %v1321_v11 = vld [vmem:[%s4041_s4 + $0x18] sm:$0xff] }
0x11ed   :  { %3212 = vpow2.f32 %v2721_v13 }
0x11f4   :  { %v3207_v9 = vpop.eup %3206 }
0x11f5   :  { %v3209_v10 = vpop.eup %3208  ;;  %1148 = vrot.lane.b32.xlu0 %v3207_v9, %s3477_s6  ;;  %v1320_v9 = vld [vmem:[%s4041_s4 + $0x10] sm:$0xff] }
0x11f6   :  { %1150 = vrot.lane.b32.xlu1 %v3209_v10, %s3477_s6  ;;  %v3211_v14 = vpop.eup %3210  ;;  %v3057_v10 = vpack.c.bf16 %v1319_v7, %v1318_v6  ;;  %v3060_v13 = vpack.c.bf16 %v1321_v11, %v1320_v9 }
0x11f7   :  { %v3213_v15 = vpop.eup %3212  ;;  %v1130_v17 = vadd.f32 1.0, %v3211_v14 }
0x11f8   :  { %v1131_v18 = vadd.f32 1.0, %v3213_v15  ;;  %3058 = vmatpush3.bf16.msra.mxu1 %v3057_v10 }
0x11f9   :  { %3214 = vrcp.f32 %v1130_v17  ;;  %3059 = vmatprep.subr.bf16.mxu1 %v3474_v0  ;;  %v1408_v17 = vld [vmem:[#allocation7] sm:$0xff] }
0x11fa   :  { %3216 = vrcp.f32 %v1131_v18 }
0x11fc   :  { %3061 = vmatpush3.bf16.msra.mxu1 %v3060_v13 }
0x11fd   :  { %3068 = vmatprep.subr.bf16.mxu1 %v3474_v0 }
0x1203   :  { %v3215_v19 = vpop.eup %3214 }
0x1204   :  { %v3217_v22 = vpop.eup %3216  ;;  %v1144_v28 = vmul.f32 %v3215_v19, %v1140_v26 }
0x1205   :  { %v1145_v29 = vmul.f32 %v3217_v22, %v1141_v27  ;;  %v1490_v27 = vld [vmem:[%s4045_s8] sm:$0xff] }
0x1267   :  { %v1149_v21 = vpop.permute.xlu0 %1148 }
0x1268   :  { %v1151_v23 = vpop.permute.xlu1 %1150  ;;  %v1154_v24 = vmul.f32 %v3215_v19, %v1149_v21 }
0x1269   :  { %v1155_v25 = vmul.f32 %v3217_v22, %v1151_v23 }
0x126a   :  { %1158 = vrot.lane.b32.xlu0 %v1154_v24, %s3478_s3 }
0x126b   :  { %1160 = vrot.lane.b32.xlu1 %v1155_v25, %s3478_s3 }
0x12dc   :  { %v1159_v30 = vpop.permute.xlu0 %1158 }
0x12dd   :  { %v1161_v31 = vpop.permute.xlu1 %1160  ;;  %v1164_v32 = vadd.f32 %v1159_v30, %v1144_v28  ;;  %v1491_v28 = vld [vmem:[%s4045_s8 + $0x8] sm:$0xff] }
0x12de   :  { %v1165_v33 = vadd.f32 %v1161_v31, %v1145_v29  ;;  %v2725_v29 = vld [vmem:[%s4042_s5] ss:$0 sm:$0xff]  ;;  %v3063_v31 = vpack.c.bf16 %v1491_v28, %v1490_v27  ;;  %s3479_s5 = smov 96  }
0x12df   :  { %3218 = vtanh.f32 %v1164_v32  ;;  %v1280_v60 = vrot.slane %v1164_v32, 7 }
0x12e0   :  { %3220 = vtanh.f32 %v1165_v33  ;;  %v1281_v61 = vrot.slane %v1165_v33, 7 }
0x12e9   :  { %v3219_v8 = vpop.eup %3218 }
0x12ea   :  { %v3221_v34 = vpop.eup %3220  ;;  %1170 = vrot.lane.b32.xlu0 %v3219_v8, %s3477_s6  ;;  %v1492_v8 = vld [vmem:[%s4045_s8 + $0x10] sm:$0xff] }
0x12eb   :  { %1172 = vrot.lane.b32.xlu1 %v3221_v34, %s3477_s6  ;;  %v1493_v34 = vld [vmem:[%s4045_s8 + $0x18] sm:$0xff]  ;;  %s3480_s8 = smov 16  }
0x135c   :  { %v1171_v35 = vpop.permute.xlu0 %1170 }
0x135d   :  { %v1173_v12 = vpop.permute.xlu1 %1172  ;;  %v1176_v36 = vmul.f32 %v3215_v19, %v1171_v35  ;;  %v3066_v35 = vpack.c.bf16 %v1493_v34, %v1492_v8 }
0x135e   :  { %v1177_v37 = vmul.f32 %v3217_v22, %v1173_v12  ;;  %v1574_v12 = vld [vmem:[#allocation10] sm:$0xff] }
0x135f   :  { %v1180_v38 = vrot.slane %v1176_v36, 6  ;;  %v1575_v36 = vld [vmem:[#allocation10 + $0x8] sm:$0xff] }
0x1360   :  { %v1181_v39 = vrot.slane %v1177_v37, 5  ;;  %v3836_v37 = vpack.c.bf16 %v1575_v36, %v1574_v12 }
0x1362   :  { %v1182_v40 = vsel %vm343_vm2, %v1181_v39, %v1180_v38  ;;  %v2727_v38 = vld [vmem:[#allocation8] ss:$0 sm:$0xff] }
0x1363   :  { %1183 = vrot.lane.b32.xlu0 %v1182_v40, %s3478_s3 }
0x13d5   :  { %v1184_v41 = vpop.permute.xlu0 %1183 }
0x13d6   :  { %2919 = vmatmul.mubr.msk.f32.vlgmr.msra.gmra.mrb[8].mxu0 %vm212_vm3, %v1184_v41 }
0x13d7   :  { %2934 = vmatprep.mubr.msk.f32.mxu0 %vm3475_vm0, %v3476_v1  ;;  %2933 = vmatpush3.msra.mxu0 %v1408_v17 }
0x13d8   :  { %3062 = vmatprep.subr.bf16.mxu0 %v3474_v0 }
0x14a9   :  { %v1253_v42 = vpop.f32.mrb[8].mxu0 }
0x14aa   :  { %v1258_v43 = vrot.slane %v1253_v42, 1  ;;  %v1259_v44 = vrot.slane %v1253_v42, 2  ;;  %v2920_v45 = vpop.f32.mrb[9].mxu0 }
0x14ac   :  { %v1262_v46 = vadd.f32 %v1258_v43, %v3677_v20  ;;  %v1263_v47 = vadd.f32 %v1259_v44, %v3675_v16  ;;  %v2729_v44 = vld [vmem:[#allocation11] ss:$0 sm:$0xff] }
0x14ae   :  { %3222 = vtanh.f32 %v1262_v46  ;;  %v2723_v50 = vmul.f32 -1.442695, %v1262_v46  ;;  %v2724_v51 = vmul.f32 -1.442695, %v1263_v47 }
0x14af   :  { %3224 = vtanh.f32 %v1263_v47 }
0x14b0   :  { %3226 = vpow2.f32 %v2723_v50 }
0x14b1   :  { %3228 = vpow2.f32 %v2724_v51 }
0x14b8   :  { %v3223_v48 = vpop.eup %3222 }
0x14b9   :  { %v3225_v49 = vpop.eup %3224  ;;  %1288 = vrot.lane.b32.xlu1 %v3223_v48, %s3477_s6 }
0x14ba   :  { %1290 = vrot.lane.b32.xlu0 %v3225_v49, %s3477_s6  ;;  %v3227_v52 = vpop.eup %3226 }
0x14bb   :  { %v3229_v53 = vpop.eup %3228  ;;  %v1270_v54 = vadd.f32 1.0, %v3227_v52 }
0x14bc   :  { %v1271_v55 = vadd.f32 1.0, %v3229_v53 }
0x14bd   :  { %3230 = vrcp.f32 %v1270_v54 }
0x14be   :  { %3232 = vrcp.f32 %v1271_v55 }
0x14c7   :  { %v3231_v20 = vpop.eup %3230 }
0x14c8   :  { %v3233_v56 = vpop.eup %3232  ;;  %v1284_v62 = vmul.f32 %v3231_v20, %v1280_v60 }
0x14c9   :  { %v1285_v63 = vmul.f32 %v3233_v56, %v1281_v61 }
0x152b   :  { %v1289_v16 = vpop.permute.xlu1 %1288 }
0x152c   :  { %v1291_v57 = vpop.permute.xlu0 %1290  ;;  %v1294_v58 = vmul.f32 %v3231_v20, %v1289_v16 }
0x152d   :  { %v1295_v59 = vmul.f32 %v3233_v56, %v1291_v57 }
0x152e   :  { %1298 = vrot.lane.b32.xlu1 %v1294_v58, %s3478_s3 }
0x152f   :  { %1300 = vrot.lane.b32.xlu0 %v1295_v59, %s3478_s3 }
0x15a0   :  { %v1299_v2 = vpop.permute.xlu1 %1298 }
0x15a1   :  { %v1301_v3 = vpop.permute.xlu0 %1300  ;;  %v1304_v4 = vadd.f32 %v1299_v2, %v1284_v62 }
0x15a2   :  { %v1305_v5 = vadd.f32 %v1301_v3, %v1285_v63 }
0x15a3   :  { %3234 = vtanh.f32 %v1304_v4 }
0x15a4   :  { %3236 = vtanh.f32 %v1305_v5 }
0x15ad   :  { %v3235_v14 = vpop.eup %3234 }
0x15ae   :  { %v3237_v15 = vpop.eup %3236  ;;  %1310 = vrot.lane.b32.xlu1 %v3235_v14, %s3477_s6 }
0x15af   :  { %1312 = vrot.lane.b32.xlu0 %v3237_v15, %s3477_s6 }
0x1620   :  { %v1311_v18 = vpop.permute.xlu1 %1310 }
0x1621   :  { %v1313_v19 = vpop.permute.xlu0 %1312  ;;  %v1316_v21 = vmul.f32 %v3231_v20, %v1311_v18 }
0x1622   :  { %v1317_v22 = vmul.f32 %v3233_v56, %v1313_v19 }
0x1623   :  { %v1331_v23 = vrot.slane %v1316_v21, 7 }
0x1624   :  { %v1332_v24 = vrot.slane %v1317_v22, 6 }
0x1626   :  { %v1333_v25 = vsel %vm343_vm2, %v1332_v24, %v1331_v23 }
0x1627   :  { %1334 = vrot.lane.b32.xlu1 %v1333_v25, %s3478_s3 }
0x1699   :  { %v1335_v26 = vpop.permute.xlu1 %1334 }
0x169a   :  { %2930 = vmatmul.mubr.msk.f32.vlgmr.msra.gmra.mrb[8].mxu1 %vm212_vm3, %v1335_v26 }
0x169b   :  { %2952 = vmatprep.mubr.msk.f32.mxu1 %vm3475_vm0, %v3476_v1  ;;  %3070 = vmatpush3.bf16.msra.mxu1 %v3836_v37 }
0x169c   :  { %3071 = vmatprep.subr.bf16.mxu1 %v3474_v0 }
0x169e   :  { %2953 = vmatmul.mubr.f32.vlgmr.msra.gmra.mrb[10].mxu1 %v3476_v1 }
0x169f   :  { %3073 = vmatpush3.bf16.msra.mxu1 %v3836_v37  ;;  %2959 = vmatprep.mubr.msk.f32.mxu1 %vm3475_vm0, %v3476_v1 }
0x16a0   :  { %3077 = vmatprep.subr.bf16.mxu1 %v3474_v0 }
0x176d   :  { %v1404_v30 = vpop.f32.mrb[8].mxu1 }
0x176e   :  { %v1405_v32 = vadd.f32 %v2725_v29, %v1404_v30  ;;  %v2931_v33 = vpop.f32.mrb[9].mxu1 }
0x1770   :  { %2935 = vmatmul.mubr.msk.f32.vlgmr.msra.gmra.mrb[10].mxu0 %vm1416_vm4, %v1405_v32 }
0x1771   :  { %3064 = vmatpush3.bf16.msra.mxu0 %v3063_v31  ;;  %2945 = vmatprep.mubr.msk.f32.mxu0 %vm3475_vm0, %v3476_v1  ;;  %v1644_v42 = vpop.f32.mrb[10].mxu1 }
0x1772   :  { %3065 = vmatprep.subr.bf16.mxu0 %v3474_v0  ;;  %v2954_v43 = vpop.f32.mrb[11].mxu1 }
0x1775   :  { %3067 = vmatpush3.bf16.msra.mxu0 %v3066_v35 }
0x1776   :  { %3074 = vmatprep.subr.bf16.mxu0 %v3474_v0 }
0x1843   :  { %v1486_v39 = vpop.f32.mrb[10].mxu0 }
0x1844   :  { %v1487_v40 = vadd.f32 %v2727_v38, %v1486_v39  ;;  %v2936_v41 = vpop.f32.mrb[11].mxu0 }
0x1846   :  { %2946 = vmatmul.mubr.msk.f32.vlgmr.msra.gmra.mrb[12].mxu0 %vm212_vm3, %v1487_v40 }
0x1847   :  { %3076 = vmatpush3.bf16.msra.mxu0 %v3836_v37  ;;  %2966 = vmatprep.mubr.msk.f32.mxu0 %vm3475_vm0, %v3476_v1 }
0x1848   :  { %3080 = vmatprep.subr.bf16.mxu0 %v3474_v0 }
0x1919   :  { %v1570_v45 = vpop.f32.mrb[12].mxu0 }
0x191a   :  { %v3851_v46 = vadd.f32 %v2729_v44, %v1570_v45  ;;  %v2947_v47 = vpop.f32.mrb[13].mxu0 }
0x191c   :  { %v1648_v48 = vadd.f32 %v1644_v42, %v3851_v46 }
0x191e   :  { %3238 = vtanh.f32 %v1648_v48  ;;  %v2731_v50 = vmul.f32 -1.442695, %v1648_v48 }
0x1920   :  { %3240 = vpow2.f32 %v2731_v50 }
0x1928   :  { %v3239_v49 = vpop.eup %3238 }
0x1929   :  { %1658 = vrot.lane.b32.xlu0 %v3239_v49, %s3479_s5 }
0x192a   :  { %v3241_v51 = vpop.eup %3240 }
0x192b   :  { %v1652_v52 = vadd.f32 1.0, %v3241_v51 }
0x192d   :  { %3242 = vrcp.f32 %v1652_v52 }
0x1937   :  { %v3243_v53 = vpop.eup %3242 }
0x1938   :  { %v1656_v20 = vmul.f32 0.0, %v3243_v53 }
0x199b   :  { %v1659_v54 = vpop.permute.xlu0 %1658 }
0x199c   :  { %v1661_v55 = vmul.f32 %v3243_v53, %v1659_v54 }
0x199e   :  { %1663 = vrot.lane.b32.xlu1 %v1661_v55, %s3480_s8 }
0x1a10   :  { %v1664_v16 = vpop.permute.xlu1 %1663 }
0x1a11   :  { %v1666_v56 = vadd.f32 %v1664_v16, %v1656_v20 }
0x1a13   :  { %3244 = vtanh.f32 %v1666_v56 }
0x1a1d   :  { %v3245_v57 = vpop.eup %3244 }
0x1a1e   :  { %1669 = vrot.lane.b32.xlu0 %v3245_v57, %s3478_s3 }
0x1a90   :  { %v1670_v58 = vpop.permute.xlu0 %1669 }
0x1a91   :  { %v3857_v59 = vmul.f32 %v3243_v53, %v1670_v58 }
0x1a93   :  { %1713 = vrot.lane.b32.xlu1 %v3857_v59, %s3481_s7 }
0x1b05   :  { %v1714_v60 = vpop.permute.xlu1 %1713 }
0x1b06   :  { %2960 = vmatmul.mubr.msk.f32.vlgmr.msra.gmra.mrb[12].mxu1 %vm126_vm1, %v1714_v60 }
0x1b07   :  { %3079 = vmatpush3.bf16.msra.mxu1 %v3836_v37  ;;  %2973 = vmatprep.mubr.msk.f32.mxu1 %vm3475_vm0, %v3476_v1 }
0x1b08   :  { %3083 = vmatprep.subr.bf16.mxu1 %v3474_v0 }
0x1bd9   :  { %v1783_v61 = vpop.f32.mrb[12].mxu1 }
0x1bda   :  { %v1787_v62 = vadd.f32 %v1783_v61, %v3851_v46  ;;  %v2961_v63 = vpop.f32.mrb[13].mxu1 }
0x1bdc   :  { %3246 = vtanh.f32 %v1787_v62  ;;  %v2733_v3 = vmul.f32 -1.442695, %v1787_v62 }
0x1bde   :  { %3248 = vpow2.f32 %v2733_v3 }
0x1be6   :  { %v3247_v2 = vpop.eup %3246 }
0x1be7   :  { %1797 = vrot.lane.b32.xlu0 %v3247_v2, %s3479_s5 }
0x1be8   :  { %v3249_v4 = vpop.eup %3248 }
0x1be9   :  { %v1791_v5 = vadd.f32 1.0, %v3249_v4 }
0x1beb   :  { %3250 = vrcp.f32 %v1791_v5 }
0x1bf5   :  { %v3251_v6 = vpop.eup %3250 }
0x1bf6   :  { %v1795_v10 = vmul.f32 %v3251_v6, %v1666_v56 }
0x1c59   :  { %v1798_v7 = vpop.permute.xlu0 %1797 }
0x1c5a   :  { %v1800_v9 = vmul.f32 %v3251_v6, %v1798_v7 }
0x1c5c   :  { %1802 = vrot.lane.b32.xlu1 %v1800_v9, %s3480_s8 }
0x1cce   :  { %v1803_v11 = vpop.permute.xlu1 %1802 }
0x1ccf   :  { %v1805_v13 = vadd.f32 %v1803_v11, %v1795_v10 }
0x1cd1   :  { %3252 = vtanh.f32 %v1805_v13 }
0x1cdb   :  { %v3253_v14 = vpop.eup %3252 }
0x1cdc   :  { %1808 = vrot.lane.b32.xlu0 %v3253_v14, %s3478_s3 }
0x1d4e   :  { %v1809_v15 = vpop.permute.xlu0 %1808 }
0x1d4f   :  { %v3870_v17 = vmul.f32 %v3251_v6, %v1809_v15 }
0x1d51   :  { %1851 = vrot.lane.b32.xlu1 %v3870_v17, %s3481_s7 }
0x1dc3   :  { %v1852_v18 = vpop.permute.xlu1 %1851 }
0x1dc4   :  { %2967 = vmatmul.mubr.msk.f32.vlgmr.msra.gmra.mrb[14].mxu0 %vm126_vm1, %v1852_v18 }
0x1dc5   :  { %3082 = vmatpush3.bf16.msra.mxu0 %v3836_v37  ;;  %2980 = vmatprep.mubr.msk.f32.mxu0 %vm3475_vm0, %v3476_v1 }
0x1dc6   :  { %3086 = vmatprep.subr.bf16.mxu0 %v3474_v0 }
0x1e97   :  { %v1921_v19 = vpop.f32.mrb[14].mxu0 }
0x1e98   :  { %v1925_v21 = vadd.f32 %v1921_v19, %v3851_v46  ;;  %v2968_v22 = vpop.f32.mrb[15].mxu0 }
0x1e9a   :  { %3254 = vtanh.f32 %v1925_v21  ;;  %v2735_v24 = vmul.f32 -1.442695, %v1925_v21 }
0x1e9c   :  { %3256 = vpow2.f32 %v2735_v24 }
0x1ea4   :  { %v3255_v23 = vpop.eup %3254 }
0x1ea5   :  { %1935 = vrot.lane.b32.xlu0 %v3255_v23, %s3479_s5 }
0x1ea6   :  { %v3257_v25 = vpop.eup %3256 }
0x1ea7   :  { %v1929_v26 = vadd.f32 1.0, %v3257_v25 }
0x1ea9   :  { %3258 = vrcp.f32 %v1929_v26 }
0x1eb3   :  { %v3259_v27 = vpop.eup %3258 }
0x1eb4   :  { %v1933_v30 = vmul.f32 %v3259_v27, %v1805_v13 }
0x1f17   :  { %v1936_v28 = vpop.permute.xlu0 %1935 }
0x1f18   :  { %v1938_v29 = vmul.f32 %v3259_v27, %v1936_v28 }
0x1f1a   :  { %1940 = vrot.lane.b32.xlu1 %v1938_v29, %s3480_s8 }
0x1f8c   :  { %v1941_v31 = vpop.permute.xlu1 %1940 }
0x1f8d   :  { %v1943_v32 = vadd.f32 %v1941_v31, %v1933_v30 }
0x1f8f   :  { %3260 = vtanh.f32 %v1943_v32 }
0x1f99   :  { %v3261_v33 = vpop.eup %3260 }
0x1f9a   :  { %1946 = vrot.lane.b32.xlu0 %v3261_v33, %s3478_s3 }
0x200c   :  { %v1947_v8 = vpop.permute.xlu0 %1946 }
0x200d   :  { %v3883_v34 = vmul.f32 %v3259_v27, %v1947_v8 }
0x200f   :  { %1989 = vrot.lane.b32.xlu1 %v3883_v34, %s3481_s7 }
0x2081   :  { %v1990_v35 = vpop.permute.xlu1 %1989 }
0x2082   :  { %2974 = vmatmul.mubr.msk.f32.vlgmr.msra.gmra.mrb[14].mxu1 %vm126_vm1, %v1990_v35 }
0x2083   :  { %3085 = vmatpush3.bf16.msra.mxu1 %v3836_v37  ;;  %2987 = vmatprep.mubr.msk.f32.mxu1 %vm3475_vm0, %v3476_v1 }
0x2084   :  { %3089 = vmatprep.subr.bf16.mxu1 %v3474_v0 }
0x2155   :  { %v2059_v12 = vpop.f32.mrb[14].mxu1 }
0x2156   :  { %v2063_v36 = vadd.f32 %v2059_v12, %v3851_v46  ;;  %v2975_v38 = vpop.f32.mrb[15].mxu1 }
0x2158   :  { %3262 = vtanh.f32 %v2063_v36  ;;  %v2737_v40 = vmul.f32 -1.442695, %v2063_v36 }
0x215a   :  { %3264 = vpow2.f32 %v2737_v40 }
0x2162   :  { %v3263_v39 = vpop.eup %3262 }
0x2163   :  { %2073 = vrot.lane.b32.xlu0 %v3263_v39, %s3479_s5 }
0x2164   :  { %v3265_v41 = vpop.eup %3264 }
0x2165   :  { %v2067_v42 = vadd.f32 1.0, %v3265_v41 }
0x2167   :  { %3266 = vrcp.f32 %v2067_v42 }
0x2171   :  { %v3267_v43 = vpop.eup %3266 }
0x2172   :  { %v2071_v47 = vmul.f32 %v3267_v43, %v1943_v32 }
0x21d5   :  { %v2074_v44 = vpop.permute.xlu0 %2073 }
0x21d6   :  { %v2076_v45 = vmul.f32 %v3267_v43, %v2074_v44 }
0x21d8   :  { %2078 = vrot.lane.b32.xlu1 %v2076_v45, %s3480_s8 }
0x224a   :  { %v2079_v0 = vpop.permute.xlu1 %2078 }
0x224b   :  { %v2081_v48 = vadd.f32 %v2079_v0, %v2071_v47 }
0x224d   :  { %3268 = vtanh.f32 %v2081_v48 }
0x2257   :  { %v3269_v49 = vpop.eup %3268 }
0x2258   :  { %2084 = vrot.lane.b32.xlu0 %v3269_v49, %s3478_s3 }
0x22ca   :  { %v2085_v50 = vpop.permute.xlu0 %2084 }
0x22cb   :  { %v3896_v51 = vmul.f32 %v3267_v43, %v2085_v50  ;;  %v3482_v50 = vmov 1966171168  }
0x22cd   :  { %2127 = vrot.lane.b32.xlu1 %v3896_v51, %s3481_s7 }
0x233f   :  { %v2128_v52 = vpop.permute.xlu1 %2127 }
0x2340   :  { %2981 = vmatmul.mubr.msk.f32.vlgmr.msra.gmra.mrb[16].mxu0 %vm126_vm1, %v2128_v52  ;;  %v1675_v52 = vunpack.c.l.s4 %v3482_v50 }
0x2341   :  { %3088 = vmatpush3.bf16.msra.mxu0 %v3836_v37  ;;  %2994 = vmatprep.mubr.msk.f32.mxu0 %vm3475_vm0, %v3476_v1 }
0x2413   :  { %v2197_v53 = vpop.f32.mrb[16].mxu0 }
0x2414   :  { %v2201_v54 = vadd.f32 %v2197_v53, %v3851_v46  ;;  %v2982_v55 = vpop.f32.mrb[17].mxu0  ;;  %v1677_v53 = vlaneseq }
0x2415   :  { %v1676_v55 = vunpack.c.0.s8 %v1675_v52 }
0x2416   :  { %3270 = vtanh.f32 %v2201_v54  ;;  %v2739_v16 = vmul.f32 -1.442695, %v2201_v54 }
0x2418   :  { %3272 = vpow2.f32 %v2739_v16 }
0x2420   :  { %v3271_v20 = vpop.eup %3270 }
0x2421   :  { %2211 = vrot.lane.b32.xlu0 %v3271_v20, %s3479_s5  ;;  %v1678_v20 = vshrl.u32 %v1677_v53, 7 }
0x2422   :  { %v3273_v56 = vpop.eup %3272 }
0x2423   :  { %v2205_v57 = vadd.f32 1.0, %v3273_v56  ;;  %v3933_v16 = vsub.s32 %v1676_v55, %v1678_v20 }
0x2425   :  { %3274 = vrcp.f32 %v2205_v57 }
0x242f   :  { %v3275_v58 = vpop.eup %3274 }
0x2430   :  { %v2209_v62 = vmul.f32 %v3275_v58, %v2081_v48 }
0x2493   :  { %v2212_v60 = vpop.permute.xlu0 %2211 }
0x2494   :  { %v2214_v61 = vmul.f32 %v3275_v58, %v2212_v60  ;;  %v1819_v60 = vrot.slane %v3870_v17, %v3933_v16  ;;  %v2095_v17 = vrot.slane %v3896_v51, %v3933_v16 }
0x2496   :  { %2216 = vrot.lane.b32.xlu1 %v2214_v61, %s3480_s8  ;;  %v3942_v61 = vsub.s32 0, %v1678_v20 }
0x2508   :  { %v2217_v63 = vpop.permute.xlu1 %2216 }
0x2509   :  { %v2219_v2 = vadd.f32 %v2217_v63, %v2209_v62  ;;  %v1827_v63 = vrot.slane %v1819_v60, %v3933_v16 }
0x250b   :  { %3276 = vtanh.f32 %v2219_v2 }
0x2515   :  { %v3277_v3 = vpop.eup %3276 }
0x2516   :  { %2222 = vrot.lane.b32.xlu0 %v3277_v3, %s3478_s3 }
0x2588   :  { %v2223_v4 = vpop.permute.xlu0 %2222 }
0x2589   :  { %v3908_v5 = vmul.f32 %v3275_v58, %v2223_v4  ;;  %v1838_v4 = vrot.slane %v1827_v63, %v3942_v61 }
0x258b   :  { %2265 = vrot.lane.b32.xlu1 %v3908_v5, %s3481_s7 }
0x25fd   :  { %v2266_v6 = vpop.permute.xlu1 %2265 }
0x25fe   :  { %2988 = vmatmul.mubr.msk.f32.vlgmr.msra.gmra.mrb[16].mxu1 %vm126_vm1, %v2266_v6  ;;  %v2103_v6 = vrot.slane %v2095_v17, %v3933_v16 }
0x25ff   :  { %3091 = vmatpush3.bf16.msra.mxu1 %v3836_v37  ;;  %3001 = vmatprep.mubr.msk.f32.mxu1 %vm3475_vm0, %v3476_v1 }
0x2600   :  { %v2114_v51 = vrot.slane %v2103_v6, %v3942_v61 }
0x26d1   :  { %v2335_v7 = vpop.f32.mrb[16].mxu1 }
0x26d2   :  { %v2339_v9 = vadd.f32 %v2335_v7, %v3851_v46  ;;  %v2989_v10 = vpop.f32.mrb[17].mxu1  ;;  %v2233_v7 = vrot.slane %v3908_v5, %v3933_v16 }
0x26d4   :  { %3278 = vtanh.f32 %v2339_v9  ;;  %v2741_v13 = vmul.f32 -1.442695, %v2339_v9  ;;  %v2241_v9 = vrot.slane %v2233_v7, %v3933_v16 }
0x26d6   :  { %3280 = vpow2.f32 %v2741_v13 }
0x26de   :  { %v3279_v11 = vpop.eup %3278 }
0x26df   :  { %2349 = vrot.lane.b32.xlu0 %v3279_v11, %s3479_s5 }
0x26e0   :  { %v3281_v14 = vpop.eup %3280 }
0x26e1   :  { %v2343_v15 = vadd.f32 1.0, %v3281_v14  ;;  %v2252_v14 = vrot.slane %v2241_v9, %v3942_v61 }
0x26e3   :  { %3282 = vrcp.f32 %v2343_v15 }
0x26ed   :  { %v3283_v18 = vpop.eup %3282 }
0x26ee   :  { %v2347_v37 = vmul.f32 %v3283_v18, %v2219_v2  ;;  %v1957_v2 = vrot.slane %v3883_v34, %v3933_v16 }
0x26f0   :  { %v1965_v3 = vrot.slane %v1957_v2, %v3933_v16 }
0x26f2   :  { %v1976_v34 = vrot.slane %v1965_v3, %v3942_v61 }
0x2751   :  { %v2350_v19 = vpop.permute.xlu0 %2349 }
0x2752   :  { %v2352_v21 = vmul.f32 %v3283_v18, %v2350_v19 }
0x2754   :  { %2354 = vrot.lane.b32.xlu1 %v2352_v21, %s3480_s8 }
0x27c6   :  { %v2355_v1 = vpop.permute.xlu1 %2354 }
0x27c7   :  { %v2357_v22 = vadd.f32 %v2355_v1, %v2347_v37 }
0x27c9   :  { %3284 = vtanh.f32 %v2357_v22 }
0x27d3   :  { %v3285_v23 = vpop.eup %3284 }
0x27d4   :  { %2360 = vrot.lane.b32.xlu0 %v3285_v23, %s3478_s3 }
0x2846   :  { %v2361_v24 = vpop.permute.xlu0 %2360 }
0x2847   :  { %v3920_v25 = vmul.f32 %v3283_v18, %v2361_v24  ;;  %v1820_v24 = vcombine.high %v1819_v60, %v1819_v60 }
0x2849   :  { %2403 = vrot.lane.b32.xlu1 %v3920_v25, %s3481_s7  ;;  %v2371_v10 = vrot.slane %v3920_v25, %v3933_v16 }
0x284b   :  { %v2379_v11 = vrot.slane %v2371_v10, %v3933_v16 }
0x284d   :  { %v2390_v15 = vrot.slane %v2379_v11, %v3942_v61 }
0x28bb   :  { %v2404_v26 = vpop.permute.xlu1 %2403 }
0x28bc   :  { %2995 = vmatmul.mubr.msk.f32.vlgmr.msra.gmra.mrb[18].mxu0 %vm126_vm1, %v2404_v26 }
0x298f   :  { %v2473_v27 = vpop.f32.mrb[18].mxu0 }
0x2990   :  { %v2477_v28 = vadd.f32 %v2473_v27, %v3851_v46  ;;  %v2996_v29 = vpop.f32.mrb[19].mxu0 }
0x2992   :  { %3286 = vtanh.f32 %v2477_v28  ;;  %v2743_v31 = vmul.f32 -1.442695, %v2477_v28  ;;  %v1958_v28 = vcombine.high %v1957_v2, %v1957_v2 }
0x2994   :  { %3288 = vpow2.f32 %v2743_v31  ;;  %v1834_v31 = vrot.slane %v1820_v24, %v3933_v16 }
0x299c   :  { %v3287_v30 = vpop.eup %3286 }
0x299d   :  { %2487 = vrot.lane.b32.xlu0 %v3287_v30, %s3479_s5 }
0x299e   :  { %v3289_v32 = vpop.eup %3288 }
0x299f   :  { %v2481_v33 = vadd.f32 1.0, %v3289_v32  ;;  %v2096_v32 = vcombine.high %v2095_v17, %v2095_v17 }
0x29a1   :  { %3290 = vrcp.f32 %v2481_v33 }
0x29ab   :  { %v3291_v8 = vpop.eup %3290 }
0x29ac   :  { %v2485_v36 = vmul.f32 %v3291_v8, %v2357_v22 }
0x2a0f   :  { %v2488_v35 = vpop.permute.xlu0 %2487 }
0x2a10   :  { %v2490_v12 = vmul.f32 %v3291_v8, %v2488_v35  ;;  %v1972_v35 = vrot.slane %v1958_v28, %v3933_v16 }
0x2a12   :  { %2492 = vrot.lane.b32.xlu1 %v2490_v12, %s3480_s8  ;;  %v2234_v12 = vcombine.high %v2233_v7, %v2233_v7 }
0x2a84   :  { %v2493_v38 = vpop.permute.xlu1 %2492 }
0x2a85   :  { %v2495_v39 = vadd.f32 %v2493_v38, %v2485_v36  ;;  %v1980_v38 = vrot.slane %v1972_v35, %v3942_v61 }
0x2a87   :  { %3292 = vtanh.f32 %v2495_v39 }
0x2a91   :  { %v3293_v40 = vpop.eup %3292 }
0x2a92   :  { %2498 = vrot.lane.b32.xlu0 %v3293_v40, %s3478_s3  ;;  %v2372_v40 = vcombine.high %v2371_v10, %v2371_v10 }
0x2b04   :  { %v2499_v41 = vpop.permute.xlu0 %2498 }
0x2b05   :  { %v2501_v42 = vmul.f32 %v3291_v8, %v2499_v41  ;;  %v1842_v8 = vrot.slane %v1834_v31, %v3942_v61 }
0x2b07   :  { %2541 = vrot.lane.b32.xlu1 %v2501_v42, %s3481_s7  ;;  %v2509_v13 = vrot.slane %v2501_v42, %v3933_v16 }
0x2b09   :  { %v2517_v5 = vrot.slane %v2509_v13, %v3933_v16 }
0x2b0b   :  { %v2528_v18 = vrot.slane %v2517_v5, %v3942_v61 }
0x2b79   :  { %v2542_v43 = vpop.permute.xlu1 %2541 }
0x2b7a   :  { %3002 = vmatmul.mubr.msk.f32.vlgmr.msra.gmra.mrb[18].mxu1 %vm126_vm1, %v2542_v43  ;;  %v2248_v43 = vrot.slane %v2234_v12, %v3933_v16 }
0x2c4d   :  { %v2611_v44 = vpop.f32.mrb[18].mxu1 }
0x2c4e   :  { %v2615_v45 = vadd.f32 %v2611_v44, %v3851_v46  ;;  %v3003_v47 = vpop.f32.mrb[19].mxu1  ;;  %v1680_v46 = vrot.slane %v3857_v59, %v3933_v16  ;;  %v2386_v44 = vrot.slane %v2372_v40, %v3933_v16 }
0x2c4f   :  { %v2256_v47 = vrot.slane %v2248_v43, %v3942_v61 }
0x2c50   :  { %3294 = vtanh.f32 %v2615_v45  ;;  %v2745_v48 = vmul.f32 -1.442695, %v2615_v45  ;;  %v1688_v58 = vrot.slane %v1680_v46, %v3933_v16  ;;  %v1681_v22 = vcombine.high %v1680_v46, %v1680_v46 }
0x2c51   :  { %v2510_v45 = vcombine.high %v2509_v13, %v2509_v13 }
0x2c52   :  { %3296 = vpow2.f32 %v2745_v48  ;;  %v1699_v59 = vrot.slane %v1688_v58, %v3942_v61  ;;  %v1695_v26 = vrot.slane %v1681_v22, %v3933_v16  ;;  %v2394_v48 = vrot.slane %v2386_v44, %v3942_v61 }
0x2c54   :  { %v1703_v30 = vrot.slane %v1695_v26, %v3942_v61 }
0x2c5a   :  { %v3295_v0 = vpop.eup %3294 }
0x2c5b   :  { %2625 = vrot.lane.b32.xlu0 %v3295_v0, %s3479_s5  ;;  %v2524_v0 = vrot.slane %v2510_v45, %v3933_v16 }
0x2c5c   :  { %v3297_v49 = vpop.eup %3296 }
0x2c5d   :  { %v2619_v54 = vadd.f32 1.0, %v3297_v49  ;;  %v2532_v49 = vrot.slane %v2524_v0, %v3942_v61 }
0x2c5f   :  { %3298 = vrcp.f32 %v2619_v54 }
0x2c69   :  { %v3937_v56 = vpop.eup %3298 }
0x2c6a   :  { %v2623_v19 = vmul.f32 %v3937_v56, %v2495_v39  ;;  %v2110_v39 = vrot.slane %v2096_v32, %v3933_v16 }
0x2c6c   :  { %v2118_v42 = vrot.slane %v2110_v39, %v3942_v61 }
0x2ccd   :  { %v2626_v57 = vpop.permute.xlu0 %2625 }
0x2cce   :  { %v2628_v62 = vmul.f32 %v3937_v56, %v2626_v57 }
0x2cd0   :  { %2630 = vrot.lane.b32.xlu1 %v2628_v62, %s3480_s8 }
0x2cd4   :  { %1704 = vrot.lane.b32.xlu1 %v1699_v59, %s3481_s7 }
0x2cd8   :  { %1843 = vrot.lane.b32.xlu1 %v1838_v4, %s3481_s7 }
0x2cdc   :  { %1981 = vrot.lane.b32.xlu1 %v1976_v34, %s3481_s7 }
0x2ce0   :  { %2119 = vrot.lane.b32.xlu1 %v2114_v51, %s3481_s7 }
0x2ce4   :  { %2257 = vrot.lane.b32.xlu1 %v2252_v14, %s3481_s7 }
0x2ce8   :  { %2395 = vrot.lane.b32.xlu1 %v2390_v15, %s3481_s7 }
0x2cec   :  { %2533 = vrot.lane.b32.xlu1 %v2528_v18, %s3481_s7 }
0x2d42   :  { %v2631_v21 = vpop.permute.xlu1 %2630 }
0x2d43   :  { %v2633_v37 = vadd.f32 %v2631_v21, %v2623_v19 }
0x2d45   :  { %3300 = vtanh.f32 %v2633_v37 }
0x2d46   :  { %v1705_v1 = vpop.permute.xlu1 %1704 }
0x2d47   :  { %1711 = vst.msk [vmem:[#allocation13] sm:$0x1] %vm1710_vm5, %v1705_v1 }
0x2d4a   :  { %v1844_v23 = vpop.permute.xlu1 %1843 }
0x2d4b   :  { %1849 = vst.msk [vmem:[#allocation13 + $0x1] sm:$0x1] %vm1710_vm5, %v1844_v23 }
0x2d4e   :  { %v1982_v25 = vpop.permute.xlu1 %1981 }
0x2d4f   :  { %v3301_v27 = vpop.eup %3300  ;;  %1987 = vst.msk [vmem:[#allocation13 + $0x2] sm:$0x1] %vm1710_vm5, %v1982_v25 }
0x2d50   :  { %2636 = vrot.lane.b32.xlu0 %v3301_v27, %s3478_s3 }
0x2d52   :  { %v2120_v29 = vpop.permute.xlu1 %2119 }
0x2d53   :  { %2125 = vst.msk [vmem:[#allocation13 + $0x3] sm:$0x1] %vm1710_vm5, %v2120_v29 }
0x2d54   :  { %1706 = vrot.lane.b32.xlu0 %v1703_v30, %s3481_s7 }
0x2d56   :  { %v2258_v33 = vpop.permute.xlu1 %2257 }
0x2d57   :  { %2263 = vst.msk [vmem:[#allocation13 + $0x4] sm:$0x1] %vm1710_vm5, %v2258_v33 }
0x2d58   :  { %1845 = vrot.lane.b32.xlu0 %v1842_v8, %s3481_s7 }
0x2d5a   :  { %v2396_v36 = vpop.permute.xlu1 %2395 }
0x2d5b   :  { %2401 = vst.msk [vmem:[#allocation13 + $0x5] sm:$0x1] %vm1710_vm5, %v2396_v36 }
0x2d5c   :  { %1983 = vrot.lane.b32.xlu0 %v1980_v38, %s3481_s7 }
0x2d5e   :  { %v2534_v41 = vpop.permute.xlu1 %2533 }
0x2d5f   :  { %2539 = vst.msk [vmem:[#allocation13 + $0x6] sm:$0x1] %vm1710_vm5, %v2534_v41 }
0x2d60   :  { %2121 = vrot.lane.b32.xlu0 %v2118_v42, %s3481_s7 }
0x2d64   :  { %2259 = vrot.lane.b32.xlu0 %v2256_v47, %s3481_s7 }
0x2d68   :  { %2397 = vrot.lane.b32.xlu0 %v2394_v48, %s3481_s7 }
0x2d6c   :  { %2535 = vrot.lane.b32.xlu0 %v2532_v49, %s3481_s7 }
0x2dc2   :  { %v2637_v50 = vpop.permute.xlu0 %2636 }
0x2dc3   :  { %v2639_v52 = vmul.f32 %v3937_v56, %v2637_v50 }
0x2dc5   :  { %v2647_v53 = vrot.slane %v2639_v52, %v3933_v16 }
0x2dc6   :  { %v1707_v54 = vpop.permute.xlu0 %1706 }
0x2dc7   :  { %v2648_v55 = vcombine.high %v2647_v53, %v2647_v53  ;;  %v2655_v20 = vrot.slane %v2647_v53, %v3933_v16  ;;  %1712 = vst.msk [vmem:[#allocation13 + $0x8] sm:$0x1] %vm1710_vm5, %v1707_v54 }
0x2dc9   :  { %v2662_v46 = vrot.slane %v2648_v55, %v3933_v16  ;;  %v2666_v57 = vrot.slane %v2655_v20, %v3942_v61 }
0x2dca   :  { %v1846_v58 = vpop.permute.xlu0 %1845 }
0x2dcb   :  { %1850 = vst.msk [vmem:[#allocation13 + $0x9] sm:$0x1] %vm1710_vm5, %v1846_v58  ;;  %2671 = vrot.lane.b32.xlu1 %v2666_v57, %s3481_s7  ;;  %v2670_v60 = vrot.slane %v2662_v46, %v3942_v61 }
0x2dcd   :  { %2673 = vrot.lane.b32.xlu0 %v2670_v60, %s3481_s7 }
0x2dce   :  { %v1984_v56 = vpop.permute.xlu0 %1983 }
0x2dcf   :  { %1988 = vst.msk [vmem:[#allocation13 + $0xa] sm:$0x1] %vm1710_vm5, %v1984_v56 }
0x2dd2   :  { %v2122_v62 = vpop.permute.xlu0 %2121 }
0x2dd3   :  { %2126 = vst.msk [vmem:[#allocation13 + $0xb] sm:$0x1] %vm1710_vm5, %v2122_v62 }
0x2dd6   :  { %v2260_v63 = vpop.permute.xlu0 %2259 }
0x2dd7   :  { %2264 = vst.msk [vmem:[#allocation13 + $0xc] sm:$0x1] %vm1710_vm5, %v2260_v63 }
0x2dda   :  { %v2398_v16 = vpop.permute.xlu0 %2397 }
0x2ddb   :  { %2402 = vst.msk [vmem:[#allocation13 + $0xd] sm:$0x1] %vm1710_vm5, %v2398_v16 }
0x2dde   :  { %v2536_v2 = vpop.permute.xlu0 %2535 }
0x2ddf   :  { %2540 = vst.msk [vmem:[#allocation13 + $0xe] sm:$0x1] %vm1710_vm5, %v2536_v2 }
0x2e3d   :  { %v2672_v61 = vpop.permute.xlu1 %2671 }
0x2e3e   :  { %2677 = vst.msk [vmem:[#allocation13 + $0x7] sm:$0x1] %vm1710_vm5, %v2672_v61 }
0x2e3f   :  { %v2674_v59 = vpop.permute.xlu0 %2673 }
0x2e40   :  { %2678 = vst.msk [vmem:[#allocation13 + $0xf] sm:$0x1] %vm1710_vm5, %v2674_v59 }
0x2e41   :  { %3445 = shalt.err (!%p3442_p10)
}
0x2e42   :  { %s3446_s6 = scalar_lea.hbm %s4048_s11, 256 }
0x2e43   :  { %p3447_p11 = scmp.ne.s32.totalorder %s4048_s11, %s3446_s6  ;;  %p3450_p12 = scmp.lt.u32.totalorder %s3446_s6, %s4048_s11 }
0x2e45   :  { %p3452_p13 = pnand %p3450_p12, %p3447_p11 }
0x2e47   :  { %3455 = shalt.err (!%p3452_p13)
}
0x2e48   :  { %2690 = dma.vmem_to_hbm [thread:$0]  %s2685_s21, 256, %s4048_s11, [#allocation4], %s3468_s29, %s3468_s29, %s3469_s30  }
0x2e49   :  { %3464 = dma.done.wait [#allocation4], 256  }
0x2e4a   :  { %3465 = vsyncadd [#allocation4], 4294967040 }
0x2e4b   :  { %2694 = vsyncpa [#allocation3], 1 }
0x2e4c   :  { %2695 = vsyncpa [#allocation6], 1 }
0x2e4d   :  { %2696 = vsyncpa [#allocation9], 1 }
0x2e4e   :  { %2697 = vsyncpa [#allocation12], 1 }
0x2e4f   :  { %2698 = vsyncpa [#allocation4], 1 }

</bundles_post_ra>
